<compile_context>
chip_gen: v6e
topology: v6e:2x2x1
jax: 0.10.0
libtpu: 0.0.40
codegen_flags: <defaults>
</compile_context>

<pallas_src>
import functools

import jax
import jax.numpy as jnp
from jax.experimental import pallas as pl
from jax.experimental.pallas import tpu as pltpu


MAX_TILE_M = 1024


@functools.lru_cache(maxsize=None)
def _vmem_limit_bytes():
    """Generation-aware VMEM limit: ~3/4 of physical, capped at 96 MiB."""
    cap = None
    try:
        info = pltpu.get_tpu_info()
        cap = int(getattr(info, "vmem_capacity_bytes", 0)) or None
    except Exception:
        cap = None
    if cap is None:
        return 48 * 1024 * 1024          # safe on v5e/v6e (128 MiB) and v7x (64 MiB)
    return min(cap * 3 // 4, 96 * 1024 * 1024)


def _cparams(sem):
    return pltpu.CompilerParams(dimension_semantics=sem,
                                vmem_limit_bytes=_vmem_limit_bytes())


# ----------------------------- Pallas kernels ------------------------------

def _matmul_lrelu_kernel(p_ref, w_ref, o_ref, *, slope):
    # (TILE_M, Kp) @ (Kp, OCp) -> LeakyReLU -> bf16 lane-dense store.
    y = jnp.dot(p_ref[...], w_ref[...], preferred_element_type=jnp.float32)
    o_ref[...] = jnp.where(y >= 0, y, slope * y).astype(o_ref.dtype)


def _matmul_stats_kernel(p_ref, w_ref, y_ref, s_ref, ss_ref):
    # BN pass 1: GEMM per tile (bf16 y out) + per-split f32 sum / sum-of-squares
    # accumulated across the inner ("arbitrary") M axis.  The outer split axis
    # is "parallel": each split owns its own (1, 8, OCp) partial block.
    @pl.when(pl.program_id(1) == 0)
    def _():
        s_ref[...] = jnp.zeros_like(s_ref)
        ss_ref[...] = jnp.zeros_like(ss_ref)

    y = jnp.dot(p_ref[...], w_ref[...], preferred_element_type=jnp.float32)
    y_ref[...] = y.astype(y_ref.dtype)
    y3 = y.reshape(-1, 8, y.shape[-1])          # free sublane-group reshape
    s_ref[...] += jnp.sum(y3, axis=0, keepdims=True)
    ss_ref[...] += jnp.sum(y3 * y3, axis=0, keepdims=True)


def _scale_shift_lrelu_kernel(y_ref, sc_ref, sh_ref, o_ref, *, slope):
    # BN pass 2: one FMA + select per element (scale/shift precomputed), bf16
    # in / bf16 out, aliased in place over y.
    yn = y_ref[...].astype(jnp.float32) * sc_ref[...] + sh_ref[...]
    o_ref[...] = jnp.where(yn >= 0, yn, slope * yn).astype(o_ref.dtype)


def _matmul_batchmean_kernel(p_ref, w_ref, o_ref, *, inv_n):
    # Final conv (spatial 4->1, OC=1) + output.mean(0): rows == batch.
    y = jnp.dot(p_ref[...], w_ref[...], preferred_element_type=jnp.float32)
    o_ref[...] = jnp.sum(y, axis=0, keepdims=True) * inv_n


# ----------------------------- pallas_call glue -----------------------------

def conv_lrelu(patches, w, tile_m, n_tiles, slope=0.2):
    Mp, Kp = patches.shape
    OCp = w.shape[1]
    return pl.pallas_call(
        functools.partial(_matmul_lrelu_kernel, slope=slope),
        grid=(n_tiles,),
        in_specs=[pl.BlockSpec((tile_m, Kp), lambda i: (i, 0)),
                  pl.BlockSpec((Kp, OCp), lambda i: (0, 0))],
        out_specs=pl.BlockSpec((tile_m, OCp), lambda i: (i, 0)),
        out_shape=jax.ShapeDtypeStruct((Mp, OCp), jnp.bfloat16),
        compiler_params=_cparams(("parallel",)),
    )(patches, w)


def conv_bn_lrelu(patches, w, gamma, beta, m_true, tile_m, n_tiles,
                  slope=0.2, eps=1e-5):
    Mp, Kp = patches.shape
    OCp = w.shape[1]
    nsplit = 2 if (n_tiles >= 2 and n_tiles % 2 == 0) else 1
    tps = n_tiles // nsplit

    # Pass 1: tiled GEMM (bf16 y) + per-split f32 sum / sum-of-squares.
    y, psum, psq = pl.pallas_call(
        _matmul_stats_kernel,
        grid=(nsplit, tps),
        in_specs=[pl.BlockSpec((tile_m, Kp), lambda c, i: (c * tps + i, 0)),
                  pl.BlockSpec((Kp, OCp), lambda c, i: (0, 0))],
        out_specs=[pl.BlockSpec((tile_m, OCp), lambda c, i: (c * tps + i, 0)),
                   pl.BlockSpec((1, 8, OCp), lambda c, i: (c, 0, 0)),
                   pl.BlockSpec((1, 8, OCp), lambda c, i: (c, 0, 0))],
        out_shape=(jax.ShapeDtypeStruct((Mp, OCp), jnp.bfloat16),
                   jax.ShapeDtypeStruct((nsplit, 8, OCp), jnp.float32),
                   jax.ShapeDtypeStruct((nsplit, 8, OCp), jnp.float32)),
        compiler_params=_cparams(("parallel", "arbitrary")),
    )(patches, w)

    # Tiny XLA glue: combine partials -> per-channel scale / shift.
    # Zero-padded rows contribute 0 to sum/sumsq, so stats stay exact with
    # inv_m over the TRUE row count (training-mode biased variance, eps=1e-5).
    inv_m = 1.0 / float(m_true)
    ssum = jnp.sum(psum, axis=(0, 1))[None, :]
    ssq = jnp.sum(psq, axis=(0, 1))[None, :]
    mean = ssum * inv_m
    var = jnp.maximum(ssq * inv_m - mean * mean, 0.0)
    scale = gamma * jax.lax.rsqrt(var + eps)
    shift = beta - mean * scale

    # Pass 2: normalize + LeakyReLU in place over y (aliased), bf16 out.
    return pl.pallas_call(
        functools.partial(_scale_shift_lrelu_kernel, slope=slope),
        grid=(n_tiles,),
        in_specs=[pl.BlockSpec((tile_m, OCp), lambda i: (i, 0)),
                  pl.BlockSpec((1, OCp), lambda i: (0, 0)),
                  pl.BlockSpec((1, OCp), lambda i: (0, 0))],
        out_specs=pl.BlockSpec((tile_m, OCp), lambda i: (i, 0)),
        out_shape=jax.ShapeDtypeStruct((Mp, OCp), jnp.bfloat16),
        input_output_aliases={0: 0},
        compiler_params=_cparams(("parallel",)),
    )(y, scale, shift)


def conv_batchmean(patches, w, n_true):
    Mp, Kp = patches.shape
    OCp = w.shape[1]
    return pl.pallas_call(
        functools.partial(_matmul_batchmean_kernel, inv_n=1.0 / float(n_true)),
        grid=(1,),
        in_specs=[pl.BlockSpec((Mp, Kp), lambda i: (0, 0)),
                  pl.BlockSpec((Kp, OCp), lambda i: (0, 0))],
        out_specs=pl.BlockSpec((1, OCp), lambda i: (0, 0)),
        out_shape=jax.ShapeDtypeStruct((1, OCp), jnp.float32),
        compiler_params=_cparams(("arbitrary",)),
    )(patches, w)


# ------------------------------ im2col (glue) -------------------------------

def im2col_nhwc(x, kh, kw, stride, pad):
    """x: (N, H, W, C) bf16 -> patches (N*OH*OW, KH*KW*C); column order
    (kh, kw, c) matches the weight reordered to (KH, KW, C, OC)."""
    N, H, W, C = x.shape
    xp = jnp.pad(x, ((0, 0), (pad, pad), (pad, pad), (0, 0)))
    OH = (H + 2 * pad - kh) // stride + 1
    OW = (W + 2 * pad - kw) // stride + 1
    cols = []
    for i in range(kh):
        for j in range(kw):
            cols.append(xp[:, i:i + stride * OH:stride, j:j + stride * OW:stride, :])
    p = jnp.stack(cols, axis=3)                     # (N, OH, OW, KH*KW, C)
    p = p.reshape(N * OH * OW, kh * kw * C)
    return p, OH, OW


# ------------------------------ helpers --------------------------------------

def _round_up(x, m):
    return (x + m - 1) // m * m


def _prep_weight(w, c_in, kp, ocp):
    """(OC, IC, KH, KW) -> (Kp, OCp) bf16; rows ordered (kh, kw, c_in).  IC is
    zero-padded up to the (channel-padded) activation width and OC up to OCp,
    so channel-padded bf16 activations can be consumed without slicing."""
    oc, ic, kh, kw = w.shape
    wt = jnp.transpose(w, (2, 3, 1, 0))                       # (KH, KW, IC, OC)
    wt = jnp.pad(wt, ((0, 0), (0, 0), (0, c_in - ic), (0, ocp - oc)))
    w2d = wt.reshape(kh * kw * c_in, ocp)
    w2d = jnp.pad(w2d, ((0, kp - w2d.shape[0]), (0, 0)))
    return w2d.astype(jnp.bfloat16)


def _pick_tiles(m, kp, ocp):
    """Largest tile_m (multiple of 16, <= MAX_TILE_M) whose double-buffered
    working set fits the VMEM budget; force an even tile count >= 2 when the
    problem is big enough so both v7x TensorCores get work."""
    budget = int(_vmem_limit_bytes() * 0.8)
    m16 = _round_up(max(m, 16), 16)

    def fits(t):
        need = (2 * t * kp * 2          # double-buffered bf16 patch tiles
                + 2 * t * ocp * 2       # double-buffered bf16 output tiles
                + kp * ocp * 2          # resident bf16 weight
                + 4 * 8 * ocp * 4)      # f32 stats blocks
        return need <= budget

    tile = min(MAX_TILE_M, m16)
    while tile > 16 and not fits(tile):
        tile -= 16
    n_tiles = pl.cdiv(m16, tile)
    if m16 >= 32:
        n_tiles = max(n_tiles, 2)
        if n_tiles % 2:
            n_tiles += 1
        tile = _round_up(pl.cdiv(m16, n_tiles), 16)
    return tile, n_tiles, tile * n_tiles


# ------------------------------- model setup --------------------------------

def build_dcgan_d(key, isize, nc, ndf, n_extra_layers=0):
    assert isize % 16 == 0, "isize has to be a multiple of 16"
    keys = iter(jax.random.split(key, 64))

    def conv_w(oc, ic, kh, kw):
        # deterministic DCGAN-style init: N(0, 0.02)
        return 0.02 * jax.random.normal(next(keys), (oc, ic, kh, kw), jnp.float32)

    layers = [dict(kind="conv_lrelu", w=conv_w(ndf, nc, 4, 4), stride=2, pad=1)]
    csize, cndf = isize // 2, ndf
    for _ in range(n_extra_layers):
        layers.append(dict(kind="conv_bn_lrelu", w=conv_w(cndf, cndf, 3, 3),
                           gamma=jnp.ones((1, cndf), jnp.float32),
                           beta=jnp.zeros((1, cndf), jnp.float32),
                           stride=1, pad=1))
    while csize > 4:
        in_feat, out_feat = cndf, cndf * 2
        layers.append(dict(kind="conv_bn_lrelu", w=conv_w(out_feat, in_feat, 4, 4),
                           gamma=jnp.ones((1, out_feat), jnp.float32),
                           beta=jnp.zeros((1, out_feat), jnp.float32),
                           stride=2, pad=1))
        cndf *= 2
        csize //= 2
    layers.append(dict(kind="final", w=conv_w(1, cndf, 4, 4), stride=1, pad=0))
    return layers


# --------------------------------- forward -----------------------------------

def dcgan_d_forward(x_nchw, layers):
    N = x_nchw.shape[0]
    # NHWC bf16 from here on; channels are zero-padded to multiples of 128 by
    # the layer kernels and stay padded between layers (weights absorb it).
    x = jnp.transpose(x_nchw, (0, 2, 3, 1)).astype(jnp.bfloat16)

    for layer in layers:
        w = layer["w"]
        oc, ic, kh, kw = w.shape
        c_in = x.shape[-1]                                   # possibly padded
        patches, OH, OW = im2col_nhwc(x, kh, kw, layer["stride"], layer["pad"])
        M, K = patches.shape                                 # K = kh*kw*c_in
        Kp = _round_up(K, 128)
        OCp = _round_up(oc, 128)
        w_pad = _prep_weight(w, c_in, Kp, OCp)               # constant-folded

        if layer["kind"] == "final":
            Mp = _round_up(M, 16)                            # bf16 sublane tile
            p_pad = jnp.pad(patches, ((0, Mp - M), (0, Kp - K)))
            out = conv_batchmean(p_pad, w_pad, M)            # rows == batch
            return out[0, :oc].reshape(1)

        tile_m, n_tiles, Mp = _pick_tiles(M, Kp, OCp)
        p_pad = jnp.pad(patches, ((0, Mp - M), (0, Kp - K))) # single bf16 pad

        if layer["kind"] == "conv_lrelu":
            y = conv_lrelu(p_pad, w_pad, tile_m, n_tiles)
        else:
            g = jnp.pad(layer["gamma"], ((0, 0), (0, OCp - oc)))
            b = jnp.pad(layer["beta"], ((0, 0), (0, OCp - oc)))
            y = conv_bn_lrelu(p_pad, w_pad, g, b, M, tile_m, n_tiles)

        if Mp != M:
            y = y[:M]
        x = y.reshape(N, OH, OW, OCp)                        # stay NHWC, padded

    raise AssertionError("final layer missing")


# ------------------------- pure-JAX reference check --------------------------

def dcgan_d_reference(x, layers, slope=0.2, eps=1e-5):
    def conv(x, w, stride, pad):
        return jax.lax.conv_general_dilated(
            x, w, (stride, stride), [(pad, pad), (pad, pad)],
            dimension_numbers=("NCHW", "OIHW", "NCHW"))

    for layer in layers:
        y = conv(x, layer["w"], layer["stride"], layer["pad"])
        if layer["kind"] == "conv_lrelu":
            x = jnp.where(y >= 0, y, slope * y)
        elif layer["kind"] == "conv_bn_lrelu":
            mean = jnp.mean(y, axis=(0, 2, 3), keepdims=True)
            var = jnp.mean(jnp.square(y - mean), axis=(0, 2, 3), keepdims=True)
            yn = (y - mean) * jax.lax.rsqrt(var + eps)
            yn = yn * layer["gamma"].reshape(1, -1, 1, 1) + layer["beta"].reshape(1, -1, 1, 1)
            x = jnp.where(yn >= 0, yn, slope * yn)
        else:
            return jnp.mean(y, axis=0).reshape(1)
    raise AssertionError


# ----------------------------------- main ------------------------------------

if __name__ == "__main__":
    key = jax.random.PRNGKey(0)
    k_in, k_par = jax.random.split(key)

    # DCGAN_D(isize=16, nz=<unused in D>, nc=4, ndf=8, ngpu=1, n_extra_layers=1)
    isize, nc, ndf, n_extra_layers = 16, 4, 8, 1
    batch = 2

    x = jax.random.normal(k_in, (batch, nc, isize, isize), jnp.float32)
    layers = build_dcgan_d(k_par, isize, nc, ndf, n_extra_layers)

    fwd = jax.jit(lambda xx: dcgan_d_forward(xx, layers))
    out = jax.block_until_ready(fwd(x))
    assert out.shape == (1,)

    ref = dcgan_d_reference(x, layers)
    # bf16 activations / MXU inputs (f32 accumulation, f32 BN stats) vs f32
    # reference: loosened tolerance per review guidance.
    assert jnp.allclose(out, ref, atol=5e-2, rtol=5e-2), (out, ref)

    print("KERNEL_OK")
</pallas_src>

<mosaic_0001>
module attributes {stable_mosaic.version = 11 : i64} {
  func.func @_matmul_lrelu_kernel(%arg0: i32, %arg1: memref<64x128xbf16, #tpu.memory_space<vmem>>, %arg2: memref<128x128xbf16, #tpu.memory_space<vmem>>, %arg3: memref<64x128xbf16, #tpu.memory_space<vmem>>) attributes {dimension_semantics = [#tpu.dimension_semantics<parallel>], iteration_bounds = array<i64: 2>, scalar_prefetch = 0 : i64, scratch_operands = 0 : i64, tpu.core_type = #tpu.core_type<tc>, window_params = [{transform_indices = @transform_0, window_bounds = array<i64: 64, 128>}, {pipeline_mode = #tpu.pipeline_mode<synchronous>, transform_indices = @transform_1, window_bounds = array<i64: 128, 128>}, {transform_indices = @transform_2, window_bounds = array<i64: 64, 128>}]} {
    %c0 = arith.constant 0 : index
    %c0_0 = arith.constant 0 : index
    %0 = vector.load %arg1[%c0, %c0_0] : memref<64x128xbf16, #tpu.memory_space<vmem>>, vector<64x128xbf16>
    %c0_1 = arith.constant 0 : index
    %c0_2 = arith.constant 0 : index
    %1 = vector.load %arg2[%c0_1, %c0_2] : memref<128x128xbf16, #tpu.memory_space<vmem>>, vector<128x128xbf16>
    %cst = arith.constant dense<0.000000e+00> : vector<64x128xf32>
    %2 = tpu.matmul %0, %1, %cst {dimension_numbers = #tpu.dot_dimension_numbers<[1], [0], [0], [1], [0, 0, 1, 1], [], []>} : vector<64x128xbf16>, vector<128x128xbf16>, vector<64x128xf32> -> vector<64x128xf32>
    %cst_3 = arith.constant 0.000000e+00 : f32
    %3 = vector.broadcast %cst_3 : f32 to vector<64x128xf32>
    %4 = arith.cmpf oge, %2, %3 : vector<64x128xf32>
    %cst_4 = arith.constant 2.000000e-01 : f32
    %5 = vector.broadcast %cst_4 : f32 to vector<64x128xf32>
    %6 = arith.mulf %5, %2 : vector<64x128xf32>
    %7 = arith.select %4, %2, %6 : vector<64x128xi1>, vector<64x128xf32>
    %8 = arith.truncf %7 : vector<64x128xf32> to vector<64x128xbf16>
    %c0_5 = arith.constant 0 : index
    %c0_6 = arith.constant 0 : index
    %9 = vector.load %arg3[%c0_5, %c0_6] : memref<64x128xbf16, #tpu.memory_space<vmem>>, vector<64x128xbf16>
    tpu.vector_store %arg3[%c0_5, %c0_6], %8 {strides = array<i32>} : memref<64x128xbf16, #tpu.memory_space<vmem>>, vector<64x128xbf16>,
    return
  }
  func.func @transform_0(%arg0: i32) -> (i32, i32) {
    %c0_i32 = arith.constant 0 : i32
    %c0_i32_0 = arith.constant 0 : i32
    return %arg0, %c0_i32 : i32, i32
  }
  func.func @transform_1(%arg0: i32) -> (i32, i32) {
    %c0_i32 = arith.constant 0 : i32
    %c0_i32_0 = arith.constant 0 : i32
    %c0_i32_1 = arith.constant 0 : i32
    return %c0_i32, %c0_i32_0 : i32, i32
  }
  func.func @transform_2(%arg0: i32) -> (i32, i32) {
    %c0_i32 = arith.constant 0 : i32
    %c0_i32_0 = arith.constant 0 : i32
    return %arg0, %c0_i32 : i32, i32
  }
}

module attributes {stable_mosaic.version = 11 : i64} {
  func.func @_matmul_stats_kernel(%arg0: i32, %arg1: i32, %arg2: memref<64x1152xbf16, #tpu.memory_space<vmem>>, %arg3: memref<1152x128xbf16, #tpu.memory_space<vmem>>, %arg4: memref<64x128xbf16, #tpu.memory_space<vmem>>, %arg5: memref<1x8x128xf32, #tpu.memory_space<vmem>>, %arg6: memref<1x8x128xf32, #tpu.memory_space<vmem>>) attributes {dimension_semantics = [#tpu.dimension_semantics<parallel>, #tpu.dimension_semantics<arbitrary>], iteration_bounds = array<i64: 2, 1>, scalar_prefetch = 0 : i64, scratch_operands = 0 : i64, tpu.core_type = #tpu.core_type<tc>, window_params = [{transform_indices = @transform_0, window_bounds = array<i64: 64, 1152>}, {pipeline_mode = #tpu.pipeline_mode<synchronous>, transform_indices = @transform_1, window_bounds = array<i64: 1152, 128>}, {transform_indices = @transform_2, window_bounds = array<i64: 64, 128>}, {transform_indices = @transform_3, window_bounds = array<i64: 1, 8, 128>}, {transform_indices = @transform_4, window_bounds = array<i64: 1, 8, 128>}]} {
    %c0_i32 = arith.constant 0 : i32
    %0 = arith.cmpi eq, %arg1, %c0_i32 : i32
    %1 = arith.extui %0 : i1 to i32
    %c0_i32_0 = arith.constant 0 : i32
    %2 = arith.cmpi ne, %1, %c0_i32_0 : i32
    scf.if %2 {
      %cst_20 = arith.constant 0.000000e+00 : f32
      %20 = vector.broadcast %cst_20 : f32 to vector<1x8x128xf32>
      %c0_21 = arith.constant 0 : index
      %c0_22 = arith.constant 0 : index
      %c0_23 = arith.constant 0 : index
      %21 = vector.load %arg5[%c0_21, %c0_22, %c0_23] : memref<1x8x128xf32, #tpu.memory_space<vmem>>, vector<1x8x128xf32>
      tpu.vector_store %arg5[%c0_21, %c0_22, %c0_23], %20 {strides = array<i32>} : memref<1x8x128xf32, #tpu.memory_space<vmem>>, vector<1x8x128xf32>,
      %cst_24 = arith.constant 0.000000e+00 : f32
      %22 = vector.broadcast %cst_24 : f32 to vector<1x8x128xf32>
      %c0_25 = arith.constant 0 : index
      %c0_26 = arith.constant 0 : index
      %c0_27 = arith.constant 0 : index
      %23 = vector.load %arg6[%c0_25, %c0_26, %c0_27] : memref<1x8x128xf32, #tpu.memory_space<vmem>>, vector<1x8x128xf32>
      tpu.vector_store %arg6[%c0_25, %c0_26, %c0_27], %22 {strides = array<i32>} : memref<1x8x128xf32, #tpu.memory_space<vmem>>, vector<1x8x128xf32>,
    } else {
    }
    %c0 = arith.constant 0 : index
    %c0_1 = arith.constant 0 : index
    %3 = vector.load %arg2[%c0, %c0_1] : memref<64x1152xbf16, #tpu.memory_space<vmem>>, vector<64x1152xbf16>
    %c0_2 = arith.constant 0 : index
    %c0_3 = arith.constant 0 : index
    %4 = vector.load %arg3[%c0_2, %c0_3] : memref<1152x128xbf16, #tpu.memory_space<vmem>>, vector<1152x128xbf16>
    %cst = arith.constant dense<0.000000e+00> : vector<64x128xf32>
    %5 = tpu.matmul %3, %4, %cst {dimension_numbers = #tpu.dot_dimension_numbers<[1], [0], [0], [1], [0, 0, 1, 1], [], []>} : vector<64x1152xbf16>, vector<1152x128xbf16>, vector<64x128xf32> -> vector<64x128xf32>
    %6 = arith.truncf %5 : vector<64x128xf32> to vector<64x128xbf16>
    %c0_4 = arith.constant 0 : index
    %c0_5 = arith.constant 0 : index
    %7 = vector.load %arg4[%c0_4, %c0_5] : memref<64x128xbf16, #tpu.memory_space<vmem>>, vector<64x128xbf16>
    tpu.vector_store %arg4[%c0_4, %c0_5], %6 {strides = array<i32>} : memref<64x128xbf16, #tpu.memory_space<vmem>>, vector<64x128xbf16>,
    %8 = vector.shape_cast %5 : vector<64x128xf32> to vector<8x8x128xf32>
    %c0_6 = arith.constant 0 : index
    %c0_7 = arith.constant 0 : index
    %c0_8 = arith.constant 0 : index
    %9 = vector.load %arg5[%c0_6, %c0_7, %c0_8] : memref<1x8x128xf32, #tpu.memory_space<vmem>>, vector<1x8x128xf32>
    %cst_9 = arith.constant dense<0.000000e+00> : vector<8x128xf32>
    %10 = vector.multi_reduction <add>, %8, %cst_9 [0] : vector<8x8x128xf32> to vector<8x128xf32>
    %11 = vector.shape_cast %10 : vector<8x128xf32> to vector<1x8x128xf32>
    %12 = arith.addf %9, %11 : vector<1x8x128xf32>
    %c0_10 = arith.constant 0 : index
    %c0_11 = arith.constant 0 : index
    %c0_12 = arith.constant 0 : index
    %13 = vector.load %arg5[%c0_10, %c0_11, %c0_12] : memref<1x8x128xf32, #tpu.memory_space<vmem>>, vector<1x8x128xf32>
    tpu.vector_store %arg5[%c0_10, %c0_11, %c0_12], %12 {strides = array<i32>} : memref<1x8x128xf32, #tpu.memory_space<vmem>>, vector<1x8x128xf32>,
    %c0_13 = arith.constant 0 : index
    %c0_14 = arith.constant 0 : index
    %c0_15 = arith.constant 0 : index
    %14 = vector.load %arg6[%c0_13, %c0_14, %c0_15] : memref<1x8x128xf32, #tpu.memory_space<vmem>>, vector<1x8x128xf32>
    %15 = arith.mulf %8, %8 : vector<8x8x128xf32>
    %cst_16 = arith.constant dense<0.000000e+00> : vector<8x128xf32>
    %16 = vector.multi_reduction <add>, %15, %cst_16 [0] : vector<8x8x128xf32> to vector<8x128xf32>
    %17 = vector.shape_cast %16 : vector<8x128xf32> to vector<1x8x128xf32>
    %18 = arith.addf %14, %17 : vector<1x8x128xf32>
    %c0_17 = arith.constant 0 : index
    %c0_18 = arith.constant 0 : index
    %c0_19 = arith.constant 0 : index
    %19 = vector.load %arg6[%c0_17, %c0_18, %c0_19] : memref<1x8x128xf32, #tpu.memory_space<vmem>>, vector<1x8x128xf32>
    tpu.vector_store %arg6[%c0_17, %c0_18, %c0_19], %18 {strides = array<i32>} : memref<1x8x128xf32, #tpu.memory_space<vmem>>, vector<1x8x128xf32>,
    return
  }
  func.func @transform_0(%arg0: i32, %arg1: i32) -> (i32, i32) {
    %c1_i32 = arith.constant 1 : i32
    %0 = arith.muli %arg0, %c1_i32 : i32
    %1 = arith.addi %0, %arg1 : i32
    %c0_i32 = arith.constant 0 : i32
    %c0_i32_0 = arith.constant 0 : i32
    return %1, %c0_i32 : i32, i32
  }
  func.func @transform_1(%arg0: i32, %arg1: i32) -> (i32, i32) {
    %c0_i32 = arith.constant 0 : i32
    %c0_i32_0 = arith.constant 0 : i32
    %c0_i32_1 = arith.constant 0 : i32
    return %c0_i32, %c0_i32_0 : i32, i32
  }
  func.func @transform_2(%arg0: i32, %arg1: i32) -> (i32, i32) {
    %c1_i32 = arith.constant 1 : i32
    %0 = arith.muli %arg0, %c1_i32 : i32
    %1 = arith.addi %0, %arg1 : i32
    %c0_i32 = arith.constant 0 : i32
    %c0_i32_0 = arith.constant 0 : i32
    return %1, %c0_i32 : i32, i32
  }
  func.func @transform_3(%arg0: i32, %arg1: i32) -> (i32, i32, i32) {
    %c0_i32 = arith.constant 0 : i32
    %c0_i32_0 = arith.constant 0 : i32
    %c0_i32_1 = arith.constant 0 : i32
    return %arg0, %c0_i32, %c0_i32_0 : i32, i32, i32
  }
  func.func @transform_4(%arg0: i32, %arg1: i32) -> (i32, i32, i32) {
    %c0_i32 = arith.constant 0 : i32
    %c0_i32_0 = arith.constant 0 : i32
    %c0_i32_1 = arith.constant 0 : i32
    return %arg0, %c0_i32, %c0_i32_0 : i32, i32, i32
  }
}

module attributes {stable_mosaic.version = 11 : i64} {
  func.func @_scale_shift_lrelu_kernel(%arg0: i32, %arg1: memref<64x128xbf16, #tpu.memory_space<vmem>>, %arg2: memref<1x128xf32, #tpu.memory_space<vmem>>, %arg3: memref<1x128xf32, #tpu.memory_space<vmem>>, %arg4: memref<64x128xbf16, #tpu.memory_space<vmem>>) attributes {dimension_semantics = [#tpu.dimension_semantics<parallel>], iteration_bounds = array<i64: 2>, scalar_prefetch = 0 : i64, scratch_operands = 0 : i64, tpu.core_type = #tpu.core_type<tc>, window_params = [{transform_indices = @transform_0, window_bounds = array<i64: 64, 128>}, {pipeline_mode = #tpu.pipeline_mode<synchronous>, transform_indices = @transform_1, window_bounds = array<i64: 1, 128>}, {pipeline_mode = #tpu.pipeline_mode<synchronous>, transform_indices = @transform_2, window_bounds = array<i64: 1, 128>}, {transform_indices = @transform_3, window_bounds = array<i64: 64, 128>}]} {
    %c0 = arith.constant 0 : index
    %c0_0 = arith.constant 0 : index
    %0 = vector.load %arg1[%c0, %c0_0] : memref<64x128xbf16, #tpu.memory_space<vmem>>, vector<64x128xbf16>
    %1 = arith.extf %0 : vector<64x128xbf16> to vector<64x128xf32>
    %c0_1 = arith.constant 0 : index
    %c0_2 = arith.constant 0 : index
    %2 = vector.load %arg2[%c0_1, %c0_2] : memref<1x128xf32, #tpu.memory_space<vmem>>, vector<1x128xf32>
    %3 = vector.broadcast %2 : vector<1x128xf32> to vector<64x128xf32>
    %4 = arith.mulf %1, %3 : vector<64x128xf32>
    %c0_3 = arith.constant 0 : index
    %c0_4 = arith.constant 0 : index
    %5 = vector.load %arg3[%c0_3, %c0_4] : memref<1x128xf32, #tpu.memory_space<vmem>>, vector<1x128xf32>
    %6 = vector.broadcast %5 : vector<1x128xf32> to vector<64x128xf32>
    %7 = arith.addf %4, %6 : vector<64x128xf32>
    %cst = arith.constant 0.000000e+00 : f32
    %8 = vector.broadcast %cst : f32 to vector<64x128xf32>
    %9 = arith.cmpf oge, %7, %8 : vector<64x128xf32>
    %cst_5 = arith.constant 2.000000e-01 : f32
    %10 = vector.broadcast %cst_5 : f32 to vector<64x128xf32>
    %11 = arith.mulf %10, %7 : vector<64x128xf32>
    %12 = arith.select %9, %7, %11 : vector<64x128xi1>, vector<64x128xf32>
    %13 = arith.truncf %12 : vector<64x128xf32> to vector<64x128xbf16>
    %c0_6 = arith.constant 0 : index
    %c0_7 = arith.constant 0 : index
    %14 = vector.load %arg4[%c0_6, %c0_7] : memref<64x128xbf16, #tpu.memory_space<vmem>>, vector<64x128xbf16>
    tpu.vector_store %arg4[%c0_6, %c0_7], %13 {strides = array<i32>} : memref<64x128xbf16, #tpu.memory_space<vmem>>, vector<64x128xbf16>,
    return
  }
  func.func @transform_0(%arg0: i32) -> (i32, i32) {
    %c0_i32 = arith.constant 0 : i32
    %c0_i32_0 = arith.constant 0 : i32
    return %arg0, %c0_i32 : i32, i32
  }
  func.func @transform_1(%arg0: i32) -> (i32, i32) {
    %c0_i32 = arith.constant 0 : i32
    %c0_i32_0 = arith.constant 0 : i32
    %c0_i32_1 = arith.constant 0 : i32
    return %c0_i32, %c0_i32_0 : i32, i32
  }
  func.func @transform_2(%arg0: i32) -> (i32, i32) {
    %c0_i32 = arith.constant 0 : i32
    %c0_i32_0 = arith.constant 0 : i32
    %c0_i32_1 = arith.constant 0 : i32
    return %c0_i32, %c0_i32_0 : i32, i32
  }
  func.func @transform_3(%arg0: i32) -> (i32, i32) {
    %c0_i32 = arith.constant 0 : i32
    %c0_i32_0 = arith.constant 0 : i32
    return %arg0, %c0_i32 : i32, i32
  }
}

module attributes {stable_mosaic.version = 11 : i64} {
  func.func @_scale_shift_lrelu_kernel(%arg0: i32, %arg1: memref<16x128xbf16, #tpu.memory_space<vmem>>, %arg2: memref<1x128xf32, #tpu.memory_space<vmem>>, %arg3: memref<1x128xf32, #tpu.memory_space<vmem>>, %arg4: memref<16x128xbf16, #tpu.memory_space<vmem>>) attributes {dimension_semantics = [#tpu.dimension_semantics<parallel>], iteration_bounds = array<i64: 2>, scalar_prefetch = 0 : i64, scratch_operands = 0 : i64, tpu.core_type = #tpu.core_type<tc>, window_params = [{transform_indices = @transform_0, window_bounds = array<i64: 16, 128>}, {pipeline_mode = #tpu.pipeline_mode<synchronous>, transform_indices = @transform_1, window_bounds = array<i64: 1, 128>}, {pipeline_mode = #tpu.pipeline_mode<synchronous>, transform_indices = @transform_2, window_bounds = array<i64: 1, 128>}, {transform_indices = @transform_3, window_bounds = array<i64: 16, 128>}]} {
    %c0 = arith.constant 0 : index
    %c0_0 = arith.constant 0 : index
    %0 = vector.load %arg1[%c0, %c0_0] : memref<16x128xbf16, #tpu.memory_space<vmem>>, vector<16x128xbf16>
    %1 = arith.extf %0 : vector<16x128xbf16> to vector<16x128xf32>
    %c0_1 = arith.constant 0 : index
    %c0_2 = arith.constant 0 : index
    %2 = vector.load %arg2[%c0_1, %c0_2] : memref<1x128xf32, #tpu.memory_space<vmem>>, vector<1x128xf32>
    %3 = vector.broadcast %2 : vector<1x128xf32> to vector<16x128xf32>
    %4 = arith.mulf %1, %3 : vector<16x128xf32>
    %c0_3 = arith.constant 0 : index
    %c0_4 = arith.constant 0 : index
    %5 = vector.load %arg3[%c0_3, %c0_4] : memref<1x128xf32, #tpu.memory_space<vmem>>, vector<1x128xf32>
    %6 = vector.broadcast %5 : vector<1x128xf32> to vector<16x128xf32>
    %7 = arith.addf %4, %6 : vector<16x128xf32>
    %cst = arith.constant 0.000000e+00 : f32
    %8 = vector.broadcast %cst : f32 to vector<16x128xf32>
    %9 = arith.cmpf oge, %7, %8 : vector<16x128xf32>
    %cst_5 = arith.constant 2.000000e-01 : f32
    %10 = vector.broadcast %cst_5 : f32 to vector<16x128xf32>
    %11 = arith.mulf %10, %7 : vector<16x128xf32>
    %12 = arith.select %9, %7, %11 : vector<16x128xi1>, vector<16x128xf32>
    %13 = arith.truncf %12 : vector<16x128xf32> to vector<16x128xbf16>
    %c0_6 = arith.constant 0 : index
    %c0_7 = arith.constant 0 : index
    %14 = vector.load %arg4[%c0_6, %c0_7] : memref<16x128xbf16, #tpu.memory_space<vmem>>, vector<16x128xbf16>
    tpu.vector_store %arg4[%c0_6, %c0_7], %13 {strides = array<i32>} : memref<16x128xbf16, #tpu.memory_space<vmem>>, vector<16x128xbf16>,
    return
  }
  func.func @transform_0(%arg0: i32) -> (i32, i32) {
    %c0_i32 = arith.constant 0 : i32
    %c0_i32_0 = arith.constant 0 : i32
    return %arg0, %c0_i32 : i32, i32
  }
  func.func @transform_1(%arg0: i32) -> (i32, i32) {
    %c0_i32 = arith.constant 0 : i32
    %c0_i32_0 = arith.constant 0 : i32
    %c0_i32_1 = arith.constant 0 : i32
    return %c0_i32, %c0_i32_0 : i32, i32
  }
  func.func @transform_2(%arg0: i32) -> (i32, i32) {
    %c0_i32 = arith.constant 0 : i32
    %c0_i32_0 = arith.constant 0 : i32
    %c0_i32_1 = arith.constant 0 : i32
    return %c0_i32, %c0_i32_0 : i32, i32
  }
  func.func @transform_3(%arg0: i32) -> (i32, i32) {
    %c0_i32 = arith.constant 0 : i32
    %c0_i32_0 = arith.constant 0 : i32
    return %arg0, %c0_i32 : i32, i32
  }
}

module attributes {stable_mosaic.version = 11 : i64} {
  func.func @_matmul_stats_kernel(%arg0: i32, %arg1: i32, %arg2: memref<16x2048xbf16, #tpu.memory_space<vmem>>, %arg3: memref<2048x128xbf16, #tpu.memory_space<vmem>>, %arg4: memref<16x128xbf16, #tpu.memory_space<vmem>>, %arg5: memref<1x8x128xf32, #tpu.memory_space<vmem>>, %arg6: memref<1x8x128xf32, #tpu.memory_space<vmem>>) attributes {dimension_semantics = [#tpu.dimension_semantics<parallel>, #tpu.dimension_semantics<arbitrary>], iteration_bounds = array<i64: 2, 1>, scalar_prefetch = 0 : i64, scratch_operands = 0 : i64, tpu.core_type = #tpu.core_type<tc>, window_params = [{transform_indices = @transform_0, window_bounds = array<i64: 16, 2048>}, {pipeline_mode = #tpu.pipeline_mode<synchronous>, transform_indices = @transform_1, window_bounds = array<i64: 2048, 128>}, {transform_indices = @transform_2, window_bounds = array<i64: 16, 128>}, {transform_indices = @transform_3, window_bounds = array<i64: 1, 8, 128>}, {transform_indices = @transform_4, window_bounds = array<i64: 1, 8, 128>}]} {
    %c0_i32 = arith.constant 0 : i32
    %0 = arith.cmpi eq, %arg1, %c0_i32 : i32
    %1 = arith.extui %0 : i1 to i32
    %c0_i32_0 = arith.constant 0 : i32
    %2 = arith.cmpi ne, %1, %c0_i32_0 : i32
    scf.if %2 {
      %cst_20 = arith.constant 0.000000e+00 : f32
      %20 = vector.broadcast %cst_20 : f32 to vector<1x8x128xf32>
      %c0_21 = arith.constant 0 : index
      %c0_22 = arith.constant 0 : index
      %c0_23 = arith.constant 0 : index
      %21 = vector.load %arg5[%c0_21, %c0_22, %c0_23] : memref<1x8x128xf32, #tpu.memory_space<vmem>>, vector<1x8x128xf32>
      tpu.vector_store %arg5[%c0_21, %c0_22, %c0_23], %20 {strides = array<i32>} : memref<1x8x128xf32, #tpu.memory_space<vmem>>, vector<1x8x128xf32>,
      %cst_24 = arith.constant 0.000000e+00 : f32
      %22 = vector.broadcast %cst_24 : f32 to vector<1x8x128xf32>
      %c0_25 = arith.constant 0 : index
      %c0_26 = arith.constant 0 : index
      %c0_27 = arith.constant 0 : index
      %23 = vector.load %arg6[%c0_25, %c0_26, %c0_27] : memref<1x8x128xf32, #tpu.memory_space<vmem>>, vector<1x8x128xf32>
      tpu.vector_store %arg6[%c0_25, %c0_26, %c0_27], %22 {strides = array<i32>} : memref<1x8x128xf32, #tpu.memory_space<vmem>>, vector<1x8x128xf32>,
    } else {
    }
    %c0 = arith.constant 0 : index
    %c0_1 = arith.constant 0 : index
    %3 = vector.load %arg2[%c0, %c0_1] : memref<16x2048xbf16, #tpu.memory_space<vmem>>, vector<16x2048xbf16>
    %c0_2 = arith.constant 0 : index
    %c0_3 = arith.constant 0 : index
    %4 = vector.load %arg3[%c0_2, %c0_3] : memref<2048x128xbf16, #tpu.memory_space<vmem>>, vector<2048x128xbf16>
    %cst = arith.constant dense<0.000000e+00> : vector<16x128xf32>
    %5 = tpu.matmul %3, %4, %cst {dimension_numbers = #tpu.dot_dimension_numbers<[1], [0], [0], [1], [0, 0, 1, 1], [], []>} : vector<16x2048xbf16>, vector<2048x128xbf16>, vector<16x128xf32> -> vector<16x128xf32>
    %6 = arith.truncf %5 : vector<16x128xf32> to vector<16x128xbf16>
    %c0_4 = arith.constant 0 : index
    %c0_5 = arith.constant 0 : index
    %7 = vector.load %arg4[%c0_4, %c0_5] : memref<16x128xbf16, #tpu.memory_space<vmem>>, vector<16x128xbf16>
    tpu.vector_store %arg4[%c0_4, %c0_5], %6 {strides = array<i32>} : memref<16x128xbf16, #tpu.memory_space<vmem>>, vector<16x128xbf16>,
    %8 = vector.shape_cast %5 : vector<16x128xf32> to vector<2x8x128xf32>
    %c0_6 = arith.constant 0 : index
    %c0_7 = arith.constant 0 : index
    %c0_8 = arith.constant 0 : index
    %9 = vector.load %arg5[%c0_6, %c0_7, %c0_8] : memref<1x8x128xf32, #tpu.memory_space<vmem>>, vector<1x8x128xf32>
    %cst_9 = arith.constant dense<0.000000e+00> : vector<8x128xf32>
    %10 = vector.multi_reduction <add>, %8, %cst_9 [0] : vector<2x8x128xf32> to vector<8x128xf32>
    %11 = vector.shape_cast %10 : vector<8x128xf32> to vector<1x8x128xf32>
    %12 = arith.addf %9, %11 : vector<1x8x128xf32>
    %c0_10 = arith.constant 0 : index
    %c0_11 = arith.constant 0 : index
    %c0_12 = arith.constant 0 : index
    %13 = vector.load %arg5[%c0_10, %c0_11, %c0_12] : memref<1x8x128xf32, #tpu.memory_space<vmem>>, vector<1x8x128xf32>
    tpu.vector_store %arg5[%c0_10, %c0_11, %c0_12], %12 {strides = array<i32>} : memref<1x8x128xf32, #tpu.memory_space<vmem>>, vector<1x8x128xf32>,
    %c0_13 = arith.constant 0 : index
    %c0_14 = arith.constant 0 : index
    %c0_15 = arith.constant 0 : index
    %14 = vector.load %arg6[%c0_13, %c0_14, %c0_15] : memref<1x8x128xf32, #tpu.memory_space<vmem>>, vector<1x8x128xf32>
    %15 = arith.mulf %8, %8 : vector<2x8x128xf32>
    %cst_16 = arith.constant dense<0.000000e+00> : vector<8x128xf32>
    %16 = vector.multi_reduction <add>, %15, %cst_16 [0] : vector<2x8x128xf32> to vector<8x128xf32>
    %17 = vector.shape_cast %16 : vector<8x128xf32> to vector<1x8x128xf32>
    %18 = arith.addf %14, %17 : vector<1x8x128xf32>
    %c0_17 = arith.constant 0 : index
    %c0_18 = arith.constant 0 : index
    %c0_19 = arith.constant 0 : index
    %19 = vector.load %arg6[%c0_17, %c0_18, %c0_19] : memref<1x8x128xf32, #tpu.memory_space<vmem>>, vector<1x8x128xf32>
    tpu.vector_store %arg6[%c0_17, %c0_18, %c0_19], %18 {strides = array<i32>} : memref<1x8x128xf32, #tpu.memory_space<vmem>>, vector<1x8x128xf32>,
    return
  }
  func.func @transform_0(%arg0: i32, %arg1: i32) -> (i32, i32) {
    %c1_i32 = arith.constant 1 : i32
    %0 = arith.muli %arg0, %c1_i32 : i32
    %1 = arith.addi %0, %arg1 : i32
    %c0_i32 = arith.constant 0 : i32
    %c0_i32_0 = arith.constant 0 : i32
    return %1, %c0_i32 : i32, i32
  }
  func.func @transform_1(%arg0: i32, %arg1: i32) -> (i32, i32) {
    %c0_i32 = arith.constant 0 : i32
    %c0_i32_0 = arith.constant 0 : i32
    %c0_i32_1 = arith.constant 0 : i32
    return %c0_i32, %c0_i32_0 : i32, i32
  }
  func.func @transform_2(%arg0: i32, %arg1: i32) -> (i32, i32) {
    %c1_i32 = arith.constant 1 : i32
    %0 = arith.muli %arg0, %c1_i32 : i32
    %1 = arith.addi %0, %arg1 : i32
    %c0_i32 = arith.constant 0 : i32
    %c0_i32_0 = arith.constant 0 : i32
    return %1, %c0_i32 : i32, i32
  }
  func.func @transform_3(%arg0: i32, %arg1: i32) -> (i32, i32, i32) {
    %c0_i32 = arith.constant 0 : i32
    %c0_i32_0 = arith.constant 0 : i32
    %c0_i32_1 = arith.constant 0 : i32
    return %arg0, %c0_i32, %c0_i32_0 : i32, i32, i32
  }
  func.func @transform_4(%arg0: i32, %arg1: i32) -> (i32, i32, i32) {
    %c0_i32 = arith.constant 0 : i32
    %c0_i32_0 = arith.constant 0 : i32
    %c0_i32_1 = arith.constant 0 : i32
    return %arg0, %c0_i32, %c0_i32_0 : i32, i32, i32
  }
}

module attributes {stable_mosaic.version = 11 : i64} {
  func.func @_matmul_batchmean_kernel(%arg0: i32, %arg1: memref<16x2048xbf16, #tpu.memory_space<vmem>>, %arg2: memref<2048x128xbf16, #tpu.memory_space<vmem>>, %arg3: memref<1x128xf32, #tpu.memory_space<vmem>>) attributes {dimension_semantics = [#tpu.dimension_semantics<arbitrary>], iteration_bounds = array<i64: 1>, scalar_prefetch = 0 : i64, scratch_operands = 0 : i64, tpu.core_type = #tpu.core_type<tc>, window_params = [{pipeline_mode = #tpu.pipeline_mode<synchronous>, transform_indices = @transform_0, window_bounds = array<i64: 16, 2048>}, {pipeline_mode = #tpu.pipeline_mode<synchronous>, transform_indices = @transform_1, window_bounds = array<i64: 2048, 128>}, {pipeline_mode = #tpu.pipeline_mode<synchronous>, transform_indices = @transform_2, window_bounds = array<i64: 1, 128>}]} {
    %c0 = arith.constant 0 : index
    %c0_0 = arith.constant 0 : index
    %0 = vector.load %arg1[%c0, %c0_0] : memref<16x2048xbf16, #tpu.memory_space<vmem>>, vector<16x2048xbf16>
    %c0_1 = arith.constant 0 : index
    %c0_2 = arith.constant 0 : index
    %1 = vector.load %arg2[%c0_1, %c0_2] : memref<2048x128xbf16, #tpu.memory_space<vmem>>, vector<2048x128xbf16>
    %cst = arith.constant dense<0.000000e+00> : vector<16x128xf32>
    %2 = tpu.matmul %0, %1, %cst {dimension_numbers = #tpu.dot_dimension_numbers<[1], [0], [0], [1], [0, 0, 1, 1], [], []>} : vector<16x2048xbf16>, vector<2048x128xbf16>, vector<16x128xf32> -> vector<16x128xf32>
    %cst_3 = arith.constant dense<0.000000e+00> : vector<128xf32>
    %3 = vector.multi_reduction <add>, %2, %cst_3 [0] : vector<16x128xf32> to vector<128xf32>
    %4 = vector.shape_cast %3 : vector<128xf32> to vector<1x128xf32>
    %cst_4 = arith.constant 5.000000e-01 : f32
    %5 = vector.broadcast %cst_4 : f32 to vector<1x128xf32>
    %6 = arith.mulf %4, %5 : vector<1x128xf32>
    %c0_5 = arith.constant 0 : index
    %c0_6 = arith.constant 0 : index
    %7 = vector.load %arg3[%c0_5, %c0_6] : memref<1x128xf32, #tpu.memory_space<vmem>>, vector<1x128xf32>
    tpu.vector_store %arg3[%c0_5, %c0_6], %6 {strides = array<i32>} : memref<1x128xf32, #tpu.memory_space<vmem>>, vector<1x128xf32>,
    return
  }
  func.func @transform_0(%arg0: i32) -> (i32, i32) {
    %c0_i32 = arith.constant 0 : i32
    %c0_i32_0 = arith.constant 0 : i32
    %c0_i32_1 = arith.constant 0 : i32
    return %c0_i32, %c0_i32_0 : i32, i32
  }
  func.func @transform_1(%arg0: i32) -> (i32, i32) {
    %c0_i32 = arith.constant 0 : i32
    %c0_i32_0 = arith.constant 0 : i32
    %c0_i32_1 = arith.constant 0 : i32
    return %c0_i32, %c0_i32_0 : i32, i32
  }
  func.func @transform_2(%arg0: i32) -> (i32, i32) {
    %c0_i32 = arith.constant 0 : i32
    %c0_i32_0 = arith.constant 0 : i32
    %c0_i32_1 = arith.constant 0 : i32
    return %c0_i32, %c0_i32_0 : i32, i32
  }
}

</mosaic_0001>

<bundles_post_ra>
// kernel: _lambda_.6
= control target key start
LH: loop header
LB: loop body
LE: loop exit
PB: predicated region body
PF: predicated region fallthrough
CT: control target
= control target key end

     0   :  { %s586_s9 = smov 0   ;;  %s642_s0 = inlined_call_operand.vmem [shape: bf16[128,128], index: 0, kind: input, shape index: {}]   ;;  %s643_s1 = inlined_call_operand.vmem [shape: bf16[128,128], index: 1, kind: input, shape index: {}]   ;;  %s644_s2 = inlined_call_operand.vmem [shape: bf16[128,128], index: 2, kind: output, shape index: {}]  }
   0x1 LB: > { %s429_s10 = sadd.s32 4294967295, %s569_s9   ;;  %p433_p0 = scmp.ge.s32.totalorder %s569_s9, 1  ;;  %s569_s9 = sphi %s586_s9, %s12_s9  }
   0x2   : > { %p113_p1 = scmp.lt.s32.totalorder %s569_s9, 3 }
   0x4   : > { %p114_p2 = pnand %p433_p0, %p113_p1 }
   0x5   : > { %s434_s13 = sshll.u32 (!%p114_p2), %s429_s10, 3 }
   0x6   : > { %117 = sbr.rel (%p114_p2) target bundleno = 250 (0xfa), region = 28  ;;  %p136_p3 = scmp.lt.s32.totalorder (!%p114_p2), %s434_s13, 15 }
   0xb   : > { %v551_v0 = vld [vmem:[%s643_s1 + $0x38] sm:$0xff]   ;;  %v552_v1 = vld [vmem:[%s643_s1 + $0x30] sm:$0xff]   ;;  %s646_s13 = smov (!%p136_p3, %s434_s13), 15  ;;  %v553_v2 = vld [vmem:[%s643_s1 + $0x28] sm:$0xff]  }
   0xc   : > { %503 = vmatprep.subr.bf16.mxu0 %v551_v0  ;;  %527 = vmatprep.subr.bf16.mxu1 %v551_v0  ;;  %s435_s18 = sshll.u32 %s646_s13, 2  ;;  %v554_v3 = vld [vmem:[%s643_s1 + $0x20] sm:$0xff]   ;;  %v555_v6 = vld [vmem:[%s643_s1 + $0x18] sm:$0xff]   ;;  %v556_v7 = vld [vmem:[%s643_s1 + $0x10] sm:$0xff]  }
   0xd   : > { %504 = vmatpush3.bf16.msra.mxu0 %v551_v0  ;;  %535 = vmatpush3.bf16.msra.mxu1 %v551_v0  ;;  %s611_s21 = scalar_lea.vmem %s642_s0, %s435_s18  ;;  %v557_v8 = vld [vmem:[%s643_s1 + $0x8] sm:$0xff]   ;;  %v558_v9 = vld [vmem:[%s643_s1] sm:$0xff]   ;;  %s145_s6 = scalar_lea.vmem %s644_s2, %s435_s18 }
   0xe   : > { %505 = vmatprep.subr.bf16.mxu0 %v552_v1  ;;  %528 = vmatprep.subr.bf16.mxu1 %v552_v1  ;;  %v559_v4 = vld [vmem:[%s611_s21] sm:$0xff]   ;;  %v560_v5 = vld [vmem:[%s611_s21 + $0x10] sm:$0xff]   ;;  %v561_v10 = vld [vmem:[%s611_s21 + $0x8] sm:$0xff]  }
   0xf   : > { %519 = vmatprep.mubr.bf16.mxu0 %v559_v4  ;;  %523 = vmatprep.mubr.bf16.mxu1 %v560_v5  ;;  %v562_v11 = vld [vmem:[%s611_s21 + $0x18] sm:$0xff]  }
  0x11   : > { %506 = vmatpush3.bf16.msra.mxu0 %v552_v1  ;;  %536 = vmatpush3.bf16.msra.mxu1 %v552_v1 }
  0x12   : > { %507 = vmatprep.subr.bf16.mxu0 %v553_v2  ;;  %529 = vmatprep.subr.bf16.mxu1 %v553_v2 }
  0x15   : > { %508 = vmatpush3.bf16.msra.mxu0 %v553_v2  ;;  %537 = vmatpush3.bf16.msra.mxu1 %v553_v2 }
  0x16   : > { %509 = vmatprep.subr.bf16.mxu0 %v554_v3  ;;  %530 = vmatprep.subr.bf16.mxu1 %v554_v3 }
  0x19   : > { %510 = vmatpush3.bf16.msra.mxu0 %v554_v3  ;;  %538 = vmatpush3.bf16.msra.mxu1 %v554_v3 }
  0x1a   : > { %511 = vmatprep.subr.bf16.mxu0 %v555_v6  ;;  %531 = vmatprep.subr.bf16.mxu1 %v555_v6 }
  0x1d   : > { %512 = vmatpush3.bf16.msra.mxu0 %v555_v6  ;;  %539 = vmatpush3.bf16.msra.mxu1 %v555_v6 }
  0x1e   : > { %513 = vmatprep.subr.bf16.mxu0 %v556_v7  ;;  %532 = vmatprep.subr.bf16.mxu1 %v556_v7 }
  0x21   : > { %514 = vmatpush3.bf16.msra.mxu0 %v556_v7  ;;  %540 = vmatpush3.bf16.msra.mxu1 %v556_v7 }
  0x22   : > { %515 = vmatprep.subr.bf16.mxu0 %v557_v8  ;;  %533 = vmatprep.subr.bf16.mxu1 %v557_v8 }
  0x25   : > { %516 = vmatpush3.bf16.msra.mxu0 %v557_v8  ;;  %541 = vmatpush3.bf16.msra.mxu1 %v557_v8 }
  0x26   : > { %517 = vmatprep.subr.bf16.mxu0 %v558_v9  ;;  %534 = vmatprep.subr.bf16.mxu1 %v558_v9 }
  0x29   : > { %518 = vmatpush3.bf16.msra.mxu0 %v558_v9  ;;  %542 = vmatpush3.bf16.msra.mxu1 %v558_v9 }
  0x2c   : > { %520 = vmatmul.mubr.bf16.vlgmr.msra.gmra.mxu0 %v561_v10  ;;  %524 = vmatmul.mubr.bf16.vlgmr.msra.gmra.mxu1 %v562_v11 }
  0xec   : > { %v521_v12 = vpop.f32.mrf.mxu0  ;;  %v525_v13 = vpop.f32.mrf.mxu1 }
  0xed   : > { %vm311_vm0 = vcmp.ge.f32.partialorder %v521_v12, 0.0  ;;  %v319_v14 = vmul.f32 0.2, %v521_v12  ;;  %vm315_vm1 = vcmp.ge.f32.partialorder %v525_v13, 0.0  ;;  %v323_v18 = vmul.f32 0.2, %v525_v13 }
  0xee   : > { %v278_v15 = vpop.f32.mrf.mxu0  ;;  %v294_v16 = vpop.f32.mrf.mxu1 }
  0xef   : > { %v327_v17 = vsel %vm311_vm0, %v521_v12, %v319_v14  ;;  %v317_v21 = vmul.f32 0.2, %v278_v15  ;;  %vm309_vm4 = vcmp.ge.f32.partialorder %v278_v15, 0.0  ;;  %vm313_vm5 = vcmp.ge.f32.partialorder %v294_v16, 0.0 }
  0xf0   : > { %v522_v19 = vpop.f32.mrf.mxu0  ;;  %v526_v20 = vpop.f32.mrf.mxu1  ;;  %v321_v23 = vmul.f32 0.2, %v294_v16  ;;  %v331_v29 = vsel %vm315_vm1, %v525_v13, %v323_v18 }
  0xf1   : > { %vm312_vm2 = vcmp.ge.f32.partialorder %v522_v19, 0.0  ;;  %v320_v22 = vmul.f32 0.2, %v522_v19  ;;  %vm316_vm3 = vcmp.ge.f32.partialorder %v526_v20, 0.0  ;;  %v324_v24 = vmul.f32 0.2, %v526_v20 }
  0xf2   : > { %v281_v25 = vpop.f32.mrf.mxu0  ;;  %v297_v26 = vpop.f32.mrf.mxu1  ;;  %v325_v33 = vsel %vm309_vm4, %v278_v15, %v317_v21  ;;  %v329_v36 = vsel %vm313_vm5, %v294_v16, %v321_v23 }
  0xf3   : > { %v328_v27 = vsel %vm312_vm2, %v522_v19, %v320_v22  ;;  %vm310_vm6 = vcmp.ge.f32.partialorder %v281_v25, 0.0  ;;  %v318_v28 = vmul.f32 0.2, %v281_v25  ;;  %vm314_vm7 = vcmp.ge.f32.partialorder %v297_v26, 0.0 }
  0xf4   : > { %v476_v30 = vpack.c.bf16 %v328_v27, %v327_v17  ;;  %v332_v31 = vsel %vm316_vm3, %v526_v20, %v324_v24  ;;  %v322_v32 = vmul.f32 0.2, %v297_v26 }
  0xf5   : > { %v486_v34 = vpack.c.bf16 %v332_v31, %v331_v29  ;;  %v326_v35 = vsel %vm310_vm6, %v281_v25, %v318_v28 }
  0xf6   : > { %488 = vst [vmem:[%s145_s6 + $0x8] sm:$0xff] %v476_v30   ;;  %v471_v37 = vpack.c.bf16 %v326_v35, %v325_v33  ;;  %v330_v38 = vsel %vm314_vm7, %v297_v26, %v322_v32 }
  0xf7   : > { %490 = vst [vmem:[%s145_s6 + $0x18] sm:$0xff] %v486_v34   ;;  %v481_v39 = vpack.c.bf16 %v330_v38, %v329_v36 }
  0xf8   : > { %472 = vst [vmem:[%s145_s6] sm:$0xff] %v471_v37  }
  0xf9   : > { %489 = vst [vmem:[%s145_s6 + $0x10] sm:$0xff] %v481_v39  }
  0xfa PF: > { %s12_s9 = sadd.s32 1, %s569_s9  }
  0xfb   : > { %p9_p4 = scmp.ge.s32.totalorder %s12_s9, 4  }
  0xfd   :  { %11 = sbr.rel (!%p9_p4) target bundleno = 1 (0x1), region = 58 }

// kernel: _lambda_.8
= control target key start
LH: loop header
LB: loop body
LE: loop exit
PB: predicated region body
PF: predicated region fallthrough
CT: control target
= control target key end

     0   :  { %s447_s12 = smov 0   ;;  %s477_s0 = inlined_call_operand.vmem [shape: bf16[128,128], index: 0, kind: input, shape index: {}, may-alias: {0,3}]   ;;  %s478_s1 = inlined_call_operand.vmem [shape: f32[1,128], index: 1, kind: input, shape index: {}]   ;;  %s479_s2 = inlined_call_operand.vmem [shape: f32[1,128], index: 2, kind: input, shape index: {}]   ;;  %s480_s3 = inlined_call_operand.vmem [shape: bf16[128,128], index: 3, kind: output, shape index: {}, may-alias: {0,3}]  }
   0x1 LB: > { %s340_s13 = sadd.s32 4294967295, %s425_s12   ;;  %p344_p0 = scmp.ge.s32.totalorder %s425_s12, 1  ;;  %s425_s12 = sphi %s447_s12, %s13_s12  }
   0x2   : > { %p138_p1 = scmp.lt.s32.totalorder %s425_s12, 3 }
   0x4   : > { %p139_p2 = pnand %p344_p0, %p138_p1 }
   0x5   : > { %s345_s14 = sshll.u32 (!%p139_p2), %s340_s13, 3 }
   0x6   : > { %142 = sbr.rel (%p139_p2) target bundleno = 32 (0x20), region = 32  ;;  %p163_p3 = scmp.lt.s32.totalorder (!%p139_p2), %s345_s14, 15 }
   0xb   : > { %s482_s14 = smov (!%p163_p3, %s345_s14), 15  ;;  %v349_v0 = vld [vmem:[%s478_s1] ss:$0 sm:$0xff] }
   0xc   : > { %s346_s15 = sshll.u32 %s482_s14, 2  ;;  %v350_v13 = vld [vmem:[%s479_s2] ss:$0 sm:$0xff] }
   0xd   : > { %s166_s18 = scalar_lea.vmem %s477_s0, %s346_s15  ;;  %s172_s25 = scalar_lea.vmem %s480_s3, %s346_s15 }
   0xe   : > { %v370_v1 = vld [vmem:[%s166_s18] sm:$0xff]   ;;  %v405_v2 = vld [vmem:[%s166_s18 + $0x8] sm:$0xff]   ;;  %v406_v3 = vld [vmem:[%s166_s18 + $0x10] sm:$0xff]  }
   0xf   : > { %v371_v4 = vunpack.c.l.bf16 %v370_v1  ;;  %v372_v5 = vunpack.c.h.bf16 %v370_v1  ;;  %v375_v6 = vunpack.c.l.bf16 %v405_v2  ;;  %v376_v7 = vunpack.c.h.bf16 %v405_v2  ;;  %v407_v8 = vld [vmem:[%s166_s18 + $0x18] sm:$0xff]  }
  0x10   : > { %v379_v9 = vunpack.c.l.bf16 %v406_v3  ;;  %v380_v10 = vunpack.c.h.bf16 %v406_v3  ;;  %v383_v11 = vunpack.c.l.bf16 %v407_v8  ;;  %v384_v12 = vunpack.c.h.bf16 %v407_v8 }
  0x11   : > { %v197_v14 = vmul.f32 %v371_v4, %v349_v0  ;;  %v198_v15 = vmul.f32 %v372_v5, %v349_v0  ;;  %v199_v16 = vmul.f32 %v375_v6, %v349_v0  ;;  %v200_v17 = vmul.f32 %v376_v7, %v349_v0 }
  0x12   : > { %v201_v18 = vmul.f32 %v379_v9, %v349_v0  ;;  %v202_v19 = vmul.f32 %v380_v10, %v349_v0  ;;  %v203_v20 = vmul.f32 %v383_v11, %v349_v0  ;;  %v204_v21 = vmul.f32 %v384_v12, %v349_v0 }
  0x13   : > { %v212_v22 = vadd.f32 %v350_v13, %v197_v14  ;;  %v213_v23 = vadd.f32 %v350_v13, %v198_v15  ;;  %v214_v24 = vadd.f32 %v350_v13, %v199_v16  ;;  %v215_v25 = vadd.f32 %v350_v13, %v200_v17 }
  0x14   : > { %v216_v26 = vadd.f32 %v350_v13, %v201_v18  ;;  %v217_v27 = vadd.f32 %v350_v13, %v202_v19  ;;  %v218_v28 = vadd.f32 %v350_v13, %v203_v20  ;;  %v219_v29 = vadd.f32 %v350_v13, %v204_v21 }
  0x15   : > { %vm220_vm0 = vcmp.ge.f32.partialorder %v212_v22, 0.0  ;;  %vm221_vm1 = vcmp.ge.f32.partialorder %v213_v23, 0.0  ;;  %v228_v30 = vmul.f32 0.2, %v212_v22  ;;  %v229_v31 = vmul.f32 0.2, %v213_v23 }
  0x16   : > { %vm222_vm2 = vcmp.ge.f32.partialorder %v214_v24, 0.0  ;;  %vm223_vm3 = vcmp.ge.f32.partialorder %v215_v25, 0.0  ;;  %v230_v32 = vmul.f32 0.2, %v214_v24  ;;  %v231_v33 = vmul.f32 0.2, %v215_v25 }
  0x17   : > { %v236_v34 = vsel %vm220_vm0, %v212_v22, %v228_v30  ;;  %v237_v35 = vsel %vm221_vm1, %v213_v23, %v229_v31  ;;  %vm224_vm4 = vcmp.ge.f32.partialorder %v216_v26, 0.0  ;;  %vm225_vm5 = vcmp.ge.f32.partialorder %v217_v27, 0.0 }
  0x18   : > { %v388_v36 = vpack.c.bf16 %v237_v35, %v236_v34  ;;  %v238_v37 = vsel %vm222_vm2, %v214_v24, %v230_v32  ;;  %v239_v38 = vsel %vm223_vm3, %v215_v25, %v231_v33  ;;  %v232_v39 = vmul.f32 0.2, %v216_v26 }
  0x19   : > { %v393_v40 = vpack.c.bf16 %v239_v38, %v238_v37  ;;  %v233_v41 = vmul.f32 0.2, %v217_v27  ;;  %vm226_vm6 = vcmp.ge.f32.partialorder %v218_v28, 0.0  ;;  %vm227_vm7 = vcmp.ge.f32.partialorder %v219_v29, 0.0 }
  0x1a   : > { %389 = vst [vmem:[%s172_s25] sm:$0xff] %v388_v36   ;;  %v240_v42 = vsel %vm224_vm4, %v216_v26, %v232_v39  ;;  %v234_v43 = vmul.f32 0.2, %v218_v28  ;;  %v235_v44 = vmul.f32 0.2, %v219_v29 }
  0x1b   : > { %408 = vst [vmem:[%s172_s25 + $0x8] sm:$0xff] %v393_v40   ;;  %v241_v45 = vsel %vm225_vm5, %v217_v27, %v233_v41 }
  0x1c   : > { %v398_v46 = vpack.c.bf16 %v241_v45, %v240_v42  ;;  %v242_v47 = vsel %vm226_vm6, %v218_v28, %v234_v43  ;;  %v243_v48 = vsel %vm227_vm7, %v219_v29, %v235_v44 }
  0x1d   : > { %v403_v49 = vpack.c.bf16 %v243_v48, %v242_v47 }
  0x1e   : > { %409 = vst [vmem:[%s172_s25 + $0x10] sm:$0xff] %v398_v46  }
  0x1f   : > { %410 = vst [vmem:[%s172_s25 + $0x18] sm:$0xff] %v403_v49  }
  0x20 PF: > { %s13_s12 = sadd.s32 1, %s425_s12  }
  0x21   : > { %p10_p4 = scmp.ge.s32.totalorder %s13_s12, 4  }
  0x23   :  { %12 = sbr.rel (!%p10_p4) target bundleno = 1 (0x1), region = 62 }

// kernel: _lambda_.7
= control target key start
LH: loop header
LB: loop body
LE: loop exit
PB: predicated region body
PF: predicated region fallthrough
CT: control target
= control target key end

     0   :  { %s2150_s15 = smov 0   ;;  %s2152_s16 = smov 0   ;;  %s2464_s0 = inlined_call_operand.vmem [shape: bf16[128,1152], index: 0, kind: input, shape index: {}]   ;;  %s2465_s1 = inlined_call_operand.vmem [shape: bf16[1152,128], index: 1, kind: input, shape index: {}]   ;;  %s2466_s2 = inlined_call_operand.vmem [shape: bf16[128,128], index: 2, kind: output, shape index: {0}]   ;;  %s2467_s3 = inlined_call_operand.vmem [shape: f32[2,8,128], index: 3, kind: output, shape index: {1}]   ;;  %s2468_s4 = inlined_call_operand.vmem [shape: f32[2,8,128], index: 4, kind: output, shape index: {2}]  }
   0x1   :  { %s2154_s17 = smov 0  }
   0x2 LB: > { %s27_s18 = sadd.s32 1, %s2119_s16  ;;  %p1583_p0 = scmp.ge.s32.totalorder %s2123_s17, 1  ;;  %s2123_s17 = sphi %s2154_s17, %s15_s17   ;;  %s2119_s16 = sphi %s2152_s16, %s2478_s16   ;;  %s2115_s15 = sphi %s2150_s15, %s2477_s15  }
   0x3   : > { %p29_p1 = scmp.ge.s32.totalorder %s27_s18, 2  ;;  %p187_p2 = scmp.lt.s32.totalorder %s2123_s17, 3 }
   0x5   : > { %s2480_s18 = smov (%p29_p1, %s27_s18), 0  ;;  %p188_p3 = pnand %p1583_p0, %p187_p2 }
   0x7   : > { %191 = sbr.rel (%p188_p3) target bundleno = 329 (0x149), region = 28 }
   0xc   : > { %v1977_v0 = vld [vmem:[%s2465_s1 + $0x78] sm:$0xff]   ;;  %v1981_v4 = vld [vmem:[%s2465_s1 + $0x70] sm:$0xff]   ;;  %v1985_v8 = vld [vmem:[%s2465_s1 + $0x68] sm:$0xff]   ;;  %s1584_s27 = sshll.u32 %s2115_s15, 3  ;;  %p241_p5 = scmp.lt.s32.totalorder %s2115_s15, 1 }
   0xd   : > { %v1978_v1 = vld [vmem:[%s2465_s1 + $0xf8] sm:$0xff]   ;;  %1739 = vmatprep.subr.bf16.mxu0 %v1977_v0  ;;  %v1982_v5 = vld [vmem:[%s2465_s1 + $0xf0] sm:$0xff]   ;;  %v1986_v9 = vld [vmem:[%s2465_s1 + $0xe8] sm:$0xff]   ;;  %p226_p4 = scmp.lt.s32.totalorder %s1584_s27, 15 }
   0xe   : > { %v1979_v2 = vld [vmem:[%s2465_s1 + $0x38] sm:$0xff]   ;;  %1779 = vmatprep.subr.bf16.mxu1 %v1978_v1  ;;  %v1983_v6 = vld [vmem:[%s2465_s1 + $0x30] sm:$0xff]   ;;  %v1987_v10 = vld [vmem:[%s2465_s1 + $0x28] sm:$0xff]   ;;  %s2484_s15 = smov (!%p241_p5, %s2115_s15), 1 }
   0xf   : > { %v1980_v3 = vld [vmem:[%s2465_s1 + $0xb8] sm:$0xff]   ;;  %1740 = vmatpush3.bf16.msra.mxu0 %v1979_v2  ;;  %v1984_v7 = vld [vmem:[%s2465_s1 + $0xb0] sm:$0xff]   ;;  %v1988_v11 = vld [vmem:[%s2465_s1 + $0xa8] sm:$0xff]   ;;  %s2482_s27 = smov (!%p226_p4, %s1584_s27), 15 }
  0x10   : > { %1780 = vmatpush3.bf16.msra.mxu1 %v1980_v3  ;;  %1741 = vmatprep.subr.bf16.mxu0 %v1981_v4  ;;  %v1989_v12 = vld [vmem:[%s2465_s1 + $0x60] sm:$0xff]   ;;  %v1993_v16 = vld [vmem:[%s2465_s1 + $0x58] sm:$0xff]   ;;  %v1997_v20 = vld [vmem:[%s2465_s1 + $0x50] sm:$0xff]   ;;  %s1951_s29 = smul.u32 36, %s2482_s27 }
  0x11   : > { %1781 = vmatprep.subr.bf16.mxu1 %v1982_v5  ;;  %v1990_v13 = vld [vmem:[%s2465_s1 + $0xe0] sm:$0xff]   ;;  %v1994_v17 = vld [vmem:[%s2465_s1 + $0xd8] sm:$0xff]   ;;  %v1998_v21 = vld [vmem:[%s2465_s1 + $0xd0] sm:$0xff]  }
  0x12   : > { %v1991_v14 = vld [vmem:[%s2465_s1 + $0x20] sm:$0xff]   ;;  %v1995_v18 = vld [vmem:[%s2465_s1 + $0x18] sm:$0xff]   ;;  %v1999_v22 = vld [vmem:[%s2465_s1 + $0x10] sm:$0xff]   ;;  %s2267_s14 = scalar_lea.vmem %s2464_s0, %s1951_s29 }
  0x13   : > { %1742 = vmatpush3.bf16.msra.mxu0 %v1983_v6  ;;  %v1992_v15 = vld [vmem:[%s2465_s1 + $0xa0] sm:$0xff]   ;;  %v1996_v19 = vld [vmem:[%s2465_s1 + $0x98] sm:$0xff]   ;;  %v2000_v23 = vld [vmem:[%s2465_s1 + $0x90] sm:$0xff]  }
  0x14   : > { %1782 = vmatpush3.bf16.msra.mxu1 %v1984_v7  ;;  %1743 = vmatprep.subr.bf16.mxu0 %v1985_v8  ;;  %v2001_v24 = vld [vmem:[%s2465_s1 + $0x48] sm:$0xff]   ;;  %v2005_v28 = vld [vmem:[%s2465_s1 + $0x40] sm:$0xff]   ;;  %v2015_v36 = vld [vmem:[%s2465_s1 + $0x178] sm:$0xff]  }
  0x15   : > { %1783 = vmatprep.subr.bf16.mxu1 %v1986_v9  ;;  %v2002_v25 = vld [vmem:[%s2465_s1 + $0xc8] sm:$0xff]   ;;  %v2006_v29 = vld [vmem:[%s2465_s1 + $0xc0] sm:$0xff]   ;;  %v2016_v37 = vld [vmem:[%s2465_s1 + $0x1f8] sm:$0xff]  }
  0x16   : > { %v2003_v26 = vld [vmem:[%s2465_s1 + $0x8] sm:$0xff]   ;;  %v2007_v30 = vld [vmem:[%s2465_s1] sm:$0xff]   ;;  %v2017_v38 = vld [vmem:[%s2465_s1 + $0x138] sm:$0xff]  }
  0x17   : > { %1744 = vmatpush3.bf16.msra.mxu0 %v1987_v10  ;;  %v2004_v27 = vld [vmem:[%s2465_s1 + $0x88] sm:$0xff]   ;;  %v2008_v31 = vld [vmem:[%s2465_s1 + $0x80] sm:$0xff]   ;;  %v2018_v39 = vld [vmem:[%s2465_s1 + $0x1b8] sm:$0xff]  }
  0x18   : > { %1784 = vmatpush3.bf16.msra.mxu1 %v1988_v11  ;;  %1745 = vmatprep.subr.bf16.mxu0 %v1989_v12  ;;  %v2009_v32 = vld [vmem:[%s2267_s14] ss:$36 sps:$4 sm:$0xff]   ;;  %v2012_v34 = vld [vmem:[%s2267_s14 + $0x8] ss:$36 sps:$4 sm:$0xff]   ;;  %v2019_v40 = vld [vmem:[%s2465_s1 + $0x170] sm:$0xff]  }
  0x19   : > { %1785 = vmatprep.subr.bf16.mxu1 %v1990_v13  ;;  %v2011_v33 = vld [vmem:[%s2267_s14 + $0x4] ss:$36 sps:$4 sm:$0xff]   ;;  %v2014_v35 = vld [vmem:[%s2267_s14 + $0xc] ss:$36 sps:$4 sm:$0xff]   ;;  %v2025_v45 = vld [vmem:[%s2267_s14 + $0x54] ss:$36 sps:$4 sm:$0xff]  }
  0x1a   : > { %1088 = vmatprep.mubr.bf16.mxu0 %v2011_v33  ;;  %1153 = vmatprep.mubr.bf16.mxu1 %v2014_v35  ;;  %v2020_v41 = vld [vmem:[%s2465_s1 + $0x1f0] sm:$0xff]   ;;  %v2027_v46 = vld [vmem:[%s2267_s14 + $0x48] ss:$36 sps:$4 sm:$0xff]   ;;  %v2033_v52 = vld [vmem:[%s2465_s1 + $0x160] sm:$0xff]  }
  0x1b   : > { %1746 = vmatpush3.bf16.msra.mxu0 %v1991_v14  ;;  %v2021_v42 = vld [vmem:[%s2465_s1 + $0x130] sm:$0xff]   ;;  %v2029_v48 = vld [vmem:[%s2465_s1 + $0x168] sm:$0xff]   ;;  %v2034_v53 = vld [vmem:[%s2465_s1 + $0x1e0] sm:$0xff]  }
  0x1c   : > { %1786 = vmatpush3.bf16.msra.mxu1 %v1992_v15  ;;  %1747 = vmatprep.subr.bf16.mxu0 %v1993_v16  ;;  %v2022_v43 = vld [vmem:[%s2465_s1 + $0x1b0] sm:$0xff]   ;;  %v2030_v49 = vld [vmem:[%s2465_s1 + $0x1e8] sm:$0xff]   ;;  %v2035_v54 = vld [vmem:[%s2465_s1 + $0x120] sm:$0xff]  }
  0x1d   : > { %1787 = vmatprep.subr.bf16.mxu1 %v1994_v17  ;;  %v2023_v44 = vld [vmem:[%s2267_s14 + $0x4c] ss:$36 sps:$4 sm:$0xff]   ;;  %v2036_v55 = vld [vmem:[%s2465_s1 + $0x1a0] sm:$0xff]   ;;  %v2037_v56 = vld [vmem:[%s2267_s14 + $0x94] ss:$36 sps:$4 sm:$0xff]  }
  0x1e   : > { %v2028_v47 = vld [vmem:[%s2267_s14 + $0x50] ss:$36 sps:$4 sm:$0xff]   ;;  %v2031_v50 = vld [vmem:[%s2465_s1 + $0x128] sm:$0xff]   ;;  %v2039_v57 = vld [vmem:[%s2267_s14 + $0x9c] ss:$36 sps:$4 sm:$0xff]  }
  0x1f   : > { %1748 = vmatpush3.bf16.msra.mxu0 %v1995_v18  ;;  %v2032_v51 = vld [vmem:[%s2465_s1 + $0x1a8] sm:$0xff]   ;;  %v2041_v58 = vld [vmem:[%s2267_s14 + $0x90] ss:$36 sps:$4 sm:$0xff]   ;;  %v2042_v59 = vld [vmem:[%s2267_s14 + $0x98] ss:$36 sps:$4 sm:$0xff]  }
  0x20   : > { %1788 = vmatpush3.bf16.msra.mxu1 %v1996_v19  ;;  %1749 = vmatprep.subr.bf16.mxu0 %v1997_v20  ;;  %v2043_v60 = vld [vmem:[%s2465_s1 + $0x158] sm:$0xff]   ;;  %v2047_v0 = vld [vmem:[%s2465_s1 + $0x150] sm:$0xff]   ;;  %v2053_v5 = vld [vmem:[%s2267_s14 + $0xe4] ss:$36 sps:$4 sm:$0xff]  }
  0x21   : > { %1789 = vmatprep.subr.bf16.mxu1 %v1998_v21  ;;  %v2044_v61 = vld [vmem:[%s2465_s1 + $0x1d8] sm:$0xff]   ;;  %v2048_v1 = vld [vmem:[%s2465_s1 + $0x1d0] sm:$0xff]   ;;  %v2056_v7 = vld [vmem:[%s2267_s14 + $0xe0] ss:$36 sps:$4 sm:$0xff]  }
  0x22   : > { %v2045_v62 = vld [vmem:[%s2465_s1 + $0x118] sm:$0xff]   ;;  %v2049_v2 = vld [vmem:[%s2465_s1 + $0x110] sm:$0xff]   ;;  %v2057_v8 = vld [vmem:[%s2465_s1 + $0x148] sm:$0xff]  }
  0x23   : > { %1750 = vmatpush3.bf16.msra.mxu0 %v1999_v22  ;;  %v2046_v63 = vld [vmem:[%s2465_s1 + $0x198] sm:$0xff]   ;;  %v2050_v3 = vld [vmem:[%s2465_s1 + $0x190] sm:$0xff]   ;;  %v2058_v9 = vld [vmem:[%s2465_s1 + $0x1c8] sm:$0xff]  }
  0x24   : > { %1790 = vmatpush3.bf16.msra.mxu1 %v2000_v23  ;;  %1751 = vmatprep.subr.bf16.mxu0 %v2001_v24  ;;  %v2051_v4 = vld [vmem:[%s2267_s14 + $0xdc] ss:$36 sps:$4 sm:$0xff]   ;;  %v2059_v10 = vld [vmem:[%s2465_s1 + $0x108] sm:$0xff]   ;;  %v2065_v16 = vld [vmem:[%s2267_s14 + $0x10] ss:$36 sps:$4 sm:$0xff]  }
  0x25   : > { %1791 = vmatprep.subr.bf16.mxu1 %v2002_v25  ;;  %v2055_v6 = vld [vmem:[%s2267_s14 + $0xd8] ss:$36 sps:$4 sm:$0xff]   ;;  %v2060_v11 = vld [vmem:[%s2465_s1 + $0x188] sm:$0xff]   ;;  %v2061_v12 = vld [vmem:[%s2465_s1 + $0x140] sm:$0xff]  }
  0x26   : > { %v2062_v13 = vld [vmem:[%s2465_s1 + $0x1c0] sm:$0xff]   ;;  %v2067_v17 = vld [vmem:[%s2267_s14 + $0x14] ss:$36 sps:$4 sm:$0xff]   ;;  %v2089_v33 = vld [vmem:[%s2267_s14 + $0xec] ss:$36 sps:$4 sm:$0xff]  }
  0x27   : > { %1752 = vmatpush3.bf16.msra.mxu0 %v2003_v26  ;;  %v2063_v14 = vld [vmem:[%s2465_s1 + $0x100] sm:$0xff]   ;;  %v2068_v18 = vld [vmem:[%s2267_s14 + $0x18] ss:$36 sps:$4 sm:$0xff]   ;;  %v2072_v21 = vld [vmem:[%s2465_s1 + $0x230] sm:$0xff]  }
  0x28   : > { %1792 = vmatpush3.bf16.msra.mxu1 %v2004_v27  ;;  %1753 = vmatprep.subr.bf16.mxu0 %v2005_v28  ;;  %v2064_v15 = vld [vmem:[%s2465_s1 + $0x180] sm:$0xff]   ;;  %v2071_v20 = vld [vmem:[%s2465_s1 + $0x238] sm:$0xff]   ;;  %v2079_v26 = vld [vmem:[%s2465_s1 + $0x228] sm:$0xff]  }
  0x29   : > { %1793 = vmatprep.subr.bf16.mxu1 %v2006_v29  ;;  %v2070_v19 = vld [vmem:[%s2267_s14 + $0x1c] ss:$36 sps:$4 sm:$0xff]   ;;  %v2075_v23 = vld [vmem:[%s2267_s14 + $0x64] ss:$36 sps:$4 sm:$0xff]   ;;  %v2083_v28 = vld [vmem:[%s2267_s14 + $0xac] ss:$36 sps:$4 sm:$0xff]  }
  0x2a   : > { %v2073_v22 = vld [vmem:[%s2267_s14 + $0x5c] ss:$36 sps:$4 sm:$0xff]   ;;  %v2081_v27 = vld [vmem:[%s2267_s14 + $0xa4] ss:$36 sps:$4 sm:$0xff]   ;;  %v2088_v35 = vld [vmem:[%s2465_s1 + $0x210] sm:$0xff]  }
  0x2b   : > { %1754 = vmatpush3.bf16.msra.mxu0 %v2007_v30  ;;  %v2077_v24 = vld [vmem:[%s2267_s14 + $0x58] ss:$36 sps:$4 sm:$0xff]   ;;  %v2078_v25 = vld [vmem:[%s2267_s14 + $0x60] ss:$36 sps:$4 sm:$0xff]  }
  0x2c   : > { %1794 = vmatpush3.bf16.msra.mxu1 %v2008_v31  ;;  %1819 = vmatprep.subr.bf16.mxu0 %v2015_v36  ;;  %v2080_v29 = vld [vmem:[%s2465_s1 + $0x220] sm:$0xff]   ;;  %v2086_v31 = vld [vmem:[%s2267_s14 + $0xa8] ss:$36 sps:$4 sm:$0xff]  }
  0x2d   : > { %1859 = vmatprep.subr.bf16.mxu1 %v2016_v37  ;;  %v2085_v30 = vld [vmem:[%s2267_s14 + $0xa0] ss:$36 sps:$4 sm:$0xff]   ;;  %v2093_v36 = vld [vmem:[%s2267_s14 + $0xe8] ss:$36 sps:$4 sm:$0xff]  }
  0x2e   : > { %1089 = vmatmul.mubr.bf16.vlgmr.msra.gmra.mxu0 %v2009_v32  ;;  %v2087_v32 = vld [vmem:[%s2465_s1 + $0x218] sm:$0xff]   ;;  %v2095_v37 = vld [vmem:[%s2465_s1 + $0x208] sm:$0xff]  }
  0x2f   : > { %1154 = vmatmul.mubr.bf16.vlgmr.msra.gmra.mxu1 %v2012_v34  ;;  %1820 = vmatpush3.bf16.msra.mxu0 %v2017_v38  ;;  %v2091_v34 = vld [vmem:[%s2267_s14 + $0xf4] ss:$36 sps:$4 sm:$0xff]  }
  0x30   : > { %1860 = vmatpush3.bf16.msra.mxu1 %v2018_v39  ;;  %1821 = vmatprep.subr.bf16.mxu0 %v2019_v40  ;;  %v2094_v38 = vld [vmem:[%s2267_s14 + $0xf0] ss:$36 sps:$4 sm:$0xff]   ;;  %v2097_v39 = vld [vmem:[%s2267_s14 + $0x20] ss:$36 sps:$4 sm:$0xff]  }
  0x31   : > { %1861 = vmatprep.subr.bf16.mxu1 %v2020_v41  ;;  %1096 = vmatprep.mubr.bf16.mxu0 %v2023_v44  ;;  %v2098_v40 = vld [vmem:[%s2267_s14 + $0xb0] ss:$36 sps:$4 sm:$0xff]   ;;  %v2096_v41 = vld [vmem:[%s2465_s1 + $0x200] sm:$0xff]  }
  0x32   : > { %1161 = vmatprep.mubr.bf16.mxu1 %v2025_v45 }
  0x33   : > { %1822 = vmatpush3.bf16.msra.mxu0 %v2021_v42  ;;  %v2099_v42 = vld [vmem:[%s2267_s14 + $0x68] ss:$36 sps:$4 sm:$0xff]  }
  0x34   : > { %1862 = vmatpush3.bf16.msra.mxu1 %v2022_v43  ;;  %1823 = vmatprep.subr.bf16.mxu0 %v2029_v48  ;;  %v2100_v43 = vld [vmem:[%s2267_s14 + $0xf8] ss:$36 sps:$4 sm:$0xff]   ;;  %s1587_s14 = sshll.u32 %s2482_s27, 2  ;;  %s1588_s27 = sshll.u32 %s2484_s15, 3 }
  0x35   : > { %1863 = vmatprep.subr.bf16.mxu1 %v2030_v49  ;;  %s238_s25 = scalar_lea.vmem %s2466_s2, %s1587_s14  ;;  %s244_s29 = scalar_lea.vmem %s2467_s3, %s1588_s27 }
  0x36   : > { %1097 = vmatmul.mubr.bf16.gmra.mxu0 %v2027_v46  ;;  %s248_s6 = scalar_lea.vmem %s2468_s4, %s1588_s27 }
  0x37   : > { %1162 = vmatmul.mubr.bf16.gmra.mxu1 %v2028_v47  ;;  %1824 = vmatpush3.bf16.msra.mxu0 %v2031_v50 }
  0x38   : > { %1864 = vmatpush3.bf16.msra.mxu1 %v2032_v51  ;;  %1825 = vmatprep.subr.bf16.mxu0 %v2033_v52 }
  0x39   : > { %1865 = vmatprep.subr.bf16.mxu1 %v2034_v53  ;;  %1104 = vmatprep.mubr.bf16.mxu0 %v2037_v56 }
  0x3a   : > { %1169 = vmatprep.mubr.bf16.mxu1 %v2039_v57 }
  0x3b   : > { %1826 = vmatpush3.bf16.msra.mxu0 %v2035_v54 }
  0x3c   : > { %1866 = vmatpush3.bf16.msra.mxu1 %v2036_v55  ;;  %1827 = vmatprep.subr.bf16.mxu0 %v2043_v60 }
  0x3d   : > { %1867 = vmatprep.subr.bf16.mxu1 %v2044_v61 }
  0x3e   : > { %1105 = vmatmul.mubr.bf16.gmra.mxu0 %v2041_v58 }
  0x3f   : > { %1170 = vmatmul.mubr.bf16.gmra.mxu1 %v2042_v59  ;;  %1828 = vmatpush3.bf16.msra.mxu0 %v2045_v62 }
  0x40   : > { %1868 = vmatpush3.bf16.msra.mxu1 %v2046_v63  ;;  %1829 = vmatprep.subr.bf16.mxu0 %v2047_v0 }
  0x41   : > { %1869 = vmatprep.subr.bf16.mxu1 %v2048_v1  ;;  %1112 = vmatprep.mubr.bf16.mxu0 %v2051_v4 }
  0x42   : > { %1177 = vmatprep.mubr.bf16.mxu1 %v2053_v5 }
  0x43   : > { %1830 = vmatpush3.bf16.msra.mxu0 %v2049_v2 }
  0x44   : > { %1870 = vmatpush3.bf16.msra.mxu1 %v2050_v3  ;;  %1831 = vmatprep.subr.bf16.mxu0 %v2057_v8 }
  0x45   : > { %1871 = vmatprep.subr.bf16.mxu1 %v2058_v9 }
  0x46   : > { %1113 = vmatmul.mubr.bf16.gmra.mxu0 %v2055_v6 }
  0x47   : > { %1178 = vmatmul.mubr.bf16.gmra.mxu1 %v2056_v7  ;;  %1832 = vmatpush3.bf16.msra.mxu0 %v2059_v10 }
  0x48   : > { %1872 = vmatpush3.bf16.msra.mxu1 %v2060_v11  ;;  %1833 = vmatprep.subr.bf16.mxu0 %v2061_v12 }
  0x49   : > { %1873 = vmatprep.subr.bf16.mxu1 %v2062_v13  ;;  %1218 = vmatprep.mubr.bf16.mxu0 %v2067_v17 }
  0x4a   : > { %1283 = vmatprep.mubr.bf16.mxu1 %v2070_v19 }
  0x4b   : > { %1834 = vmatpush3.bf16.msra.mxu0 %v2063_v14 }
  0x4c   : > { %1874 = vmatpush3.bf16.msra.mxu1 %v2064_v15  ;;  %1911 = vmatprep.subr.bf16.mxu0 %v2071_v20 }
  0x4d   : > { %1935 = vmatprep.subr.bf16.mxu1 %v2071_v20 }
  0x4e   : > { %1219 = vmatmul.mubr.bf16.vlgmr.msra.gmra.mxu0 %v2065_v16 }
  0x4f   : > { %1284 = vmatmul.mubr.bf16.vlgmr.msra.gmra.mxu1 %v2068_v18  ;;  %1912 = vmatpush3.bf16.msra.mxu0 %v2071_v20 }
  0x50   : > { %1943 = vmatpush3.bf16.msra.mxu1 %v2071_v20  ;;  %1913 = vmatprep.subr.bf16.mxu0 %v2072_v21 }
  0x51   : > { %1936 = vmatprep.subr.bf16.mxu1 %v2072_v21  ;;  %1226 = vmatprep.mubr.bf16.mxu0 %v2073_v22 }
  0x52   : > { %1291 = vmatprep.mubr.bf16.mxu1 %v2075_v23 }
  0x53   : > { %1914 = vmatpush3.bf16.msra.mxu0 %v2072_v21 }
  0x54   : > { %1944 = vmatpush3.bf16.msra.mxu1 %v2072_v21  ;;  %1915 = vmatprep.subr.bf16.mxu0 %v2079_v26 }
  0x55   : > { %1937 = vmatprep.subr.bf16.mxu1 %v2079_v26 }
  0x56   : > { %1227 = vmatmul.mubr.bf16.gmra.mxu0 %v2077_v24 }
  0x57   : > { %1292 = vmatmul.mubr.bf16.gmra.mxu1 %v2078_v25  ;;  %1234 = vmatprep.mubr.bf16.mxu0 %v2081_v27 }
  0x58   : > { %1916 = vmatpush3.bf16.msra.mxu0 %v2079_v26  ;;  %1299 = vmatprep.mubr.bf16.mxu1 %v2083_v28 }
  0x59   : > { %1945 = vmatpush3.bf16.msra.mxu1 %v2079_v26  ;;  %1917 = vmatprep.subr.bf16.mxu0 %v2080_v29 }
  0x5a   : > { %1938 = vmatprep.subr.bf16.mxu1 %v2080_v29 }
  0x5c   : > { %1918 = vmatpush3.bf16.msra.mxu0 %v2080_v29 }
  0x5d   : > { %1946 = vmatpush3.bf16.msra.mxu1 %v2080_v29  ;;  %1919 = vmatprep.subr.bf16.mxu0 %v2087_v32 }
  0x5e   : > { %1235 = vmatmul.mubr.bf16.gmra.mxu0 %v2085_v30  ;;  %1939 = vmatprep.subr.bf16.mxu1 %v2087_v32 }
  0x5f   : > { %1300 = vmatmul.mubr.bf16.gmra.mxu1 %v2086_v31  ;;  %1242 = vmatprep.mubr.bf16.mxu0 %v2089_v33 }
  0x60   : > { %1920 = vmatpush3.bf16.msra.mxu0 %v2087_v32  ;;  %1307 = vmatprep.mubr.bf16.mxu1 %v2091_v34 }
  0x61   : > { %1947 = vmatpush3.bf16.msra.mxu1 %v2087_v32  ;;  %1921 = vmatprep.subr.bf16.mxu0 %v2088_v35 }
  0x62   : > { %1940 = vmatprep.subr.bf16.mxu1 %v2088_v35 }
  0x64   : > { %1922 = vmatpush3.bf16.msra.mxu0 %v2088_v35 }
  0x65   : > { %1948 = vmatpush3.bf16.msra.mxu1 %v2088_v35  ;;  %1923 = vmatprep.subr.bf16.mxu0 %v2095_v37 }
  0x66   : > { %1243 = vmatmul.mubr.bf16.gmra.mxu0 %v2093_v36  ;;  %1941 = vmatprep.subr.bf16.mxu1 %v2095_v37 }
  0x67   : > { %1308 = vmatmul.mubr.bf16.gmra.mxu1 %v2094_v38  ;;  %1927 = vmatprep.mubr.bf16.mxu0 %v2097_v39 }
  0x68   : > { %1924 = vmatpush3.bf16.msra.mxu0 %v2095_v37  ;;  %1931 = vmatprep.mubr.bf16.mxu1 %v2098_v40 }
  0x69   : > { %1949 = vmatpush3.bf16.msra.mxu1 %v2095_v37  ;;  %1925 = vmatprep.subr.bf16.mxu0 %v2096_v41 }
  0x6a   : > { %1942 = vmatprep.subr.bf16.mxu1 %v2096_v41 }
  0x6c   : > { %1926 = vmatpush3.bf16.msra.mxu0 %v2096_v41 }
  0x6d   : > { %1950 = vmatpush3.bf16.msra.mxu1 %v2096_v41 }
  0x6f   : > { %1928 = vmatmul.mubr.bf16.vlgmr.msra.gmra.mxu0 %v2099_v42 }
  0x70   : > { %1932 = vmatmul.mubr.bf16.vlgmr.msra.gmra.mxu1 %v2100_v43 }
  0xee   : > { %v1755_v44 = vpop.f32.mrf.mxu0 }
  0xef   : > { %v1795_v45 = vpop.f32.mrf.mxu1 }
  0xf0   : > { %v1756_v46 = vpop.f32.mrf.mxu0 }
  0xf1   : > { %v1796_v47 = vpop.f32.mrf.mxu1  ;;  %v1757_v35 = vadd.f32 %v1756_v46, %v1755_v44 }
  0xf2   : > { %v1758_v48 = vpop.f32.mrf.mxu0  ;;  %v1797_v36 = vadd.f32 %v1796_v47, %v1795_v45 }
  0xf3   : > { %v1798_v49 = vpop.f32.mrf.mxu1 }
  0xf4   : > { %v1759_v50 = vpop.f32.mrf.mxu0 }
  0xf5   : > { %v1799_v51 = vpop.f32.mrf.mxu1  ;;  %v1760_v37 = vadd.f32 %v1759_v50, %v1758_v48 }
  0xf6   : > { %v1761_v52 = vpop.f32.mrf.mxu0  ;;  %v1800_v38 = vadd.f32 %v1799_v51, %v1798_v49  ;;  %v1156_v49 = vadd.f32 %v1797_v36, %v1757_v35 }
  0xf7   : > { %v1801_v53 = vpop.f32.mrf.mxu1 }
  0xf8   : > { %v1762_v54 = vpop.f32.mrf.mxu0 }
  0xf9   : > { %v1802_v55 = vpop.f32.mrf.mxu1  ;;  %v1763_v39 = vadd.f32 %v1762_v54, %v1761_v52  ;;  %v1159_v52 = vadd.f32 %v1800_v38, %v1760_v37 }
  0xfa   : > { %v1764_v56 = vpop.f32.mrf.mxu0  ;;  %v1803_v40 = vadd.f32 %v1802_v55, %v1801_v53 }
  0xfb   : > { %v1804_v57 = vpop.f32.mrf.mxu1 }
  0xfc   : > { %v1765_v58 = vpop.f32.mrf.mxu0  ;;  %v1164_v54 = vadd.f32 %v1803_v40, %v1763_v39 }
  0xfd   : > { %v1805_v59 = vpop.f32.mrf.mxu1  ;;  %v1766_v41 = vadd.f32 %v1765_v58, %v1764_v56 }
  0xfe   : > { %v1767_v60 = vpop.f32.mrf.mxu0  ;;  %v1806_v42 = vadd.f32 %v1805_v59, %v1804_v57 }
  0xff   : > { %v1807_v61 = vpop.f32.mrf.mxu1 }
 0x100   : > { %v1768_v62 = vpop.f32.mrf.mxu0  ;;  %v1167_v53 = vadd.f32 %v1806_v42, %v1766_v41 }
 0x101   : > { %v1808_v63 = vpop.f32.mrf.mxu1 }
 0x102   : > { %v2431_v0 = vpop.f32.mrf.mxu0 }
 0x103   : > { %2469 = vst [vmem:[#allocation2_spill] sm:$0xff] %v2431_v0  ;;  %v2433_v1 = vpop.f32.mrf.mxu1 }
 0x104   : > { %2470 = vst [vmem:[#allocation3_spill] sm:$0xff] %v2433_v1  ;;  %v1771_v2 = vpop.f32.mrf.mxu0  ;;  %v1809_v1 = vadd.f32 %v1808_v63, %v1807_v61 }
 0x105   : > { %v1811_v3 = vpop.f32.mrf.mxu1 }
 0x106   : > { %v1773_v4 = vpop.f32.mrf.mxu0 }
 0x107   : > { %v1813_v5 = vpop.f32.mrf.mxu1 }
 0x108   : > { %v1774_v6 = vpop.f32.mrf.mxu0 }
 0x109   : > { %v1814_v7 = vpop.f32.mrf.mxu1  ;;  %v1775_v0 = vadd.f32 %v1774_v6, %v1773_v4 }
 0x10a   : > { %v1776_v8 = vpop.f32.mrf.mxu0  ;;  %v1815_v44 = vadd.f32 %v1814_v7, %v1813_v5  ;;  %v2473_v59 = vld [vmem:[#allocation2_spill] sm:$0xff] }
 0x10b   : > { %v1816_v9 = vpop.f32.mrf.mxu1 }
 0x10c   : > { %v1777_v10 = vpop.f32.mrf.mxu0  ;;  %v1180_v4 = vadd.f32 %v1815_v44, %v1775_v0 }
 0x10d   : > { %v1817_v11 = vpop.f32.mrf.mxu1  ;;  %v1778_v46 = vadd.f32 %v1777_v10, %v1776_v8 }
 0x10e   : > { %v1835_v12 = vpop.f32.mrf.mxu0  ;;  %v1818_v45 = vadd.f32 %v1817_v11, %v1816_v9 }
 0x10f   : > { %v1875_v13 = vpop.f32.mrf.mxu1 }
 0x110   : > { %v1836_v14 = vpop.f32.mrf.mxu0  ;;  %v1183_v5 = vadd.f32 %v1818_v45, %v1778_v46 }
 0x111   : > { %v1876_v15 = vpop.f32.mrf.mxu1  ;;  %v1837_v47 = vadd.f32 %v1836_v14, %v1835_v12 }
 0x112   : > { %v1838_v16 = vpop.f32.mrf.mxu0  ;;  %v1877_v7 = vadd.f32 %v1876_v15, %v1875_v13 }
 0x113   : > { %v2435_v17 = vpop.f32.mrf.mxu1  ;;  %v1221_v6 = vadd.f32 %v1837_v47, %v1156_v49 }
 0x114   : > { %2471 = vst [vmem:[#allocation4_spill] sm:$0xff] %v2435_v17  ;;  %v1839_v18 = vpop.f32.mrf.mxu0  ;;  %v1769_v17 = vadd.f32 %v1768_v62, %v1767_v60  ;;  %v1772_v60 = vadd.f32 %v1771_v2, %v2473_v59  ;;  %v2474_v62 = vld [vmem:[#allocation3_spill] sm:$0xff] }
 0x115   : > { %v2437_v19 = vpop.f32.mrf.mxu1  ;;  %v1812_v61 = vadd.f32 %v1811_v3, %v2474_v62  ;;  %v1840_v10 = vadd.f32 %v1839_v18, %v1838_v16  ;;  %v1286_v39 = vadd.f32 %v1877_v7, %v1221_v6 }
 0x116   : > { %2472 = vst [vmem:[#allocation5_spill] sm:$0xff] %v2437_v19  ;;  %v1841_v20 = vpop.f32.mrf.mxu0  ;;  %v1172_v57 = vadd.f32 %v1809_v1, %v1769_v17 }
 0x117   : > { %v1881_v21 = vpop.f32.mrf.mxu1  ;;  %v1175_v0 = vadd.f32 %v1812_v61, %v1772_v60 }
 0x118   : > { %v1842_v22 = vpop.f32.mrf.mxu0 }
 0x119   : > { %v1882_v23 = vpop.f32.mrf.mxu1  ;;  %v1843_v51 = vadd.f32 %v1842_v22, %v1841_v20 }
 0x11a   : > { %v1844_v24 = vpop.f32.mrf.mxu0  ;;  %v1883_v20 = vadd.f32 %v1882_v23, %v1881_v21 }
 0x11b   : > { %v1884_v25 = vpop.f32.mrf.mxu1  ;;  %v1229_v11 = vadd.f32 %v1843_v51, %v1164_v54  ;;  %v2475_v13 = vld [vmem:[#allocation4_spill] sm:$0xff] }
 0x11c   : > { %v1845_v26 = vpop.f32.mrf.mxu0 }
 0x11d   : > { %v1885_v27 = vpop.f32.mrf.mxu1  ;;  %v1846_v63 = vadd.f32 %v1845_v26, %v1844_v24  ;;  %v1224_v26 = vadd.f32 %v1840_v10, %v1159_v52  ;;  %v2476_v15 = vld [vmem:[#allocation5_spill] sm:$0xff]  ;;  %v1294_v38 = vadd.f32 %v1883_v20, %v1229_v11 }
 0x11e   : > { %v1847_v28 = vpop.f32.mrf.mxu0  ;;  %v1886_v2 = vadd.f32 %v1885_v27, %v1884_v25  ;;  %v1880_v37 = vadd.f32 %v2476_v15, %v2475_v13 }
 0x11f   : > { %v1887_v29 = vpop.f32.mrf.mxu1  ;;  %v1232_v17 = vadd.f32 %v1846_v63, %v1167_v53 }
 0x120   : > { %v1848_v30 = vpop.f32.mrf.mxu0  ;;  %v1289_v45 = vadd.f32 %v1880_v37, %v1224_v26 }
 0x121   : > { %v1888_v31 = vpop.f32.mrf.mxu1  ;;  %v1849_v12 = vadd.f32 %v1848_v30, %v1847_v28  ;;  %v1297_v27 = vadd.f32 %v1886_v2, %v1232_v17 }
 0x122   : > { %v1850_v32 = vpop.f32.mrf.mxu0  ;;  %v1889_v18 = vadd.f32 %v1888_v31, %v1887_v29 }
 0x123   : > { %v1890_v33 = vpop.f32.mrf.mxu1  ;;  %v1237_v16 = vadd.f32 %v1849_v12, %v1172_v57 }
 0x124   : > { %v1851_v34 = vpop.f32.mrf.mxu0 }
 0x125   : > { %v1891_v43 = vpop.f32.mrf.mxu1 }
 0x126   : > { %v1853_v19 = vpop.f32.mrf.mxu0  ;;  %v1892_v21 = vadd.f32 %v1891_v43, %v1890_v33 }
 0x127   : > { %v1893_v48 = vpop.f32.mrf.mxu1 }
 0x128   : > { %v1854_v50 = vpop.f32.mrf.mxu0 }
 0x129   : > { %v1855_v55 = vadd.f32 %v1854_v50, %v1853_v19  ;;  %v1894_v56 = vpop.f32.mrf.mxu1  ;;  %v1852_v19 = vadd.f32 %v1851_v34, %v1850_v32 }
 0x12a   : > { %v1856_v58 = vpop.f32.mrf.mxu0  ;;  %v1895_v35 = vadd.f32 %v1894_v56, %v1893_v48  ;;  %v1302_v48 = vadd.f32 %v1889_v18, %v1237_v16 }
 0x12b   : > { %v1896_v8 = vpop.f32.mrf.mxu1  ;;  %v1245_v22 = vadd.f32 %v1855_v55, %v1180_v4  ;;  %v1240_v30 = vadd.f32 %v1852_v19, %v1175_v0 }
 0x12c   : > { %v1857_v9 = vpop.f32.mrf.mxu0 }
 0x12d   : > { %v1858_v14 = vadd.f32 %v1857_v9, %v1856_v58  ;;  %v1897_v1 = vpop.f32.mrf.mxu1  ;;  %v1310_v23 = vadd.f32 %v1895_v35, %v1245_v22  ;;  %v1305_v33 = vadd.f32 %v1892_v21, %v1240_v30 }
 0x12e   : > { %v1898_v3 = vadd.f32 %v1897_v1, %v1896_v8 }
 0x12f   : > { %v1248_v36 = vadd.f32 %v1858_v14, %v1183_v5  ;;  %v1929_v24 = vpop.f32.mrf.mxu0 }
 0x130   : > { %v1933_v28 = vpop.f32.mrf.mxu1  ;;  %v1359_v41 = vadd.f32 %v1929_v24, %v1294_v38 }
 0x131   : > { %v1350_v32 = vpop.f32.mrf.mxu0  ;;  %v1313_v34 = vadd.f32 %v1898_v3, %v1248_v36  ;;  %v1375_v47 = vadd.f32 %v1933_v28, %v1310_v23 }
 0x132   : > { %v1366_v25 = vpop.f32.mrf.mxu1  ;;  %v1351_v42 = vadd.f32 %v1350_v32, %v1286_v39  ;;  %v1434_v59 = vmul.f32 %v1359_v41, %v1359_v41 }
 0x133   : > { %v1930_v40 = vpop.f32.mrf.mxu0  ;;  %v1367_v51 = vadd.f32 %v1366_v25, %v1302_v48  ;;  %v1438_v11 = vmul.f32 %v1375_v47, %v1375_v47 }
 0x134   : > { %v1362_v44 = vadd.f32 %v1930_v40, %v1297_v27  ;;  %v1934_v46 = vpop.f32.mrf.mxu1  ;;  %v1432_v53 = vmul.f32 %v1351_v42, %v1351_v42 }
 0x135   : > { %v1378_v29 = vadd.f32 %v1934_v46, %v1313_v34  ;;  %v1353_v31 = vpop.f32.mrf.mxu0  ;;  %v1436_v5 = vmul.f32 %v1367_v51, %v1367_v51 }
 0x136   : > { %v1724_v43 = vpack.c.bf16 %v1362_v44, %v1359_v41  ;;  %v1354_v50 = vadd.f32 %v1353_v31, %v1289_v45  ;;  %v1369_v49 = vpop.f32.mrf.mxu1  ;;  %v1435_v61 = vmul.f32 %v1362_v44, %v1362_v44 }
 0x137   : > { %v1734_v52 = vpack.c.bf16 %v1378_v29, %v1375_v47  ;;  %v1370_v54 = vadd.f32 %v1369_v49, %v1305_v33  ;;  %v1439_v20 = vmul.f32 %v1378_v29, %v1378_v29 }
 0x138   : > { %1736 = vst [vmem:[%s238_s25 + $0x8] sm:$0xff] %v1724_v43   ;;  %v1719_v55 = vpack.c.bf16 %v1354_v50, %v1351_v42  ;;  %v1422_v56 = vadd.f32 %v1354_v50, %v1351_v42  ;;  %v1433_v58 = vmul.f32 %v1354_v50, %v1354_v50 }
 0x139   : > { %1738 = vst [vmem:[%s238_s25 + $0x18] sm:$0xff] %v1734_v52   ;;  %v1729_v57 = vpack.c.bf16 %v1370_v54, %v1367_v51  ;;  %v1437_v9 = vmul.f32 %v1370_v54, %v1370_v54 }
 0x13a   : > { %1720 = vst [vmem:[%s238_s25] sm:$0xff] %v1719_v55   ;;  %v1423_v60 = vadd.f32 %v1422_v56, %v1359_v41  ;;  %v1440_v62 = vadd.f32 %v1433_v58, %v1432_v53 }
 0x13b   : > { %1737 = vst [vmem:[%s238_s25 + $0x10] sm:$0xff] %v1729_v57  }
 0x13c   : > { %v1441_v63 = vadd.f32 %v1440_v62, %v1434_v59  ;;  %v1424_v4 = vadd.f32 %v1423_v60, %v1362_v44 }
 0x13e   : > { %v1425_v6 = vadd.f32 %v1424_v4, %v1367_v51  ;;  %v1442_v7 = vadd.f32 %v1441_v63, %v1435_v61 }
 0x140   : > { %v1426_v8 = vadd.f32 %v1425_v6, %v1370_v54  ;;  %v1443_v10 = vadd.f32 %v1442_v7, %v1436_v5 }
 0x142   : > { %v1427_v12 = vadd.f32 %v1426_v8, %v1375_v47  ;;  %v1444_v14 = vadd.f32 %v1443_v10, %v1437_v9 }
 0x144   : > { %v1428_v19 = vadd.f32 %v1427_v12, %v1378_v29  ;;  %v1445_v22 = vadd.f32 %v1444_v14, %v1438_v11 }
 0x146   : > { %v1446_v35 = vadd.f32 %v1445_v22, %v1439_v20  ;;  %1430 = vst [vmem:[%s244_s29] sm:$0xff] %v1428_v19 }
 0x148   : > { %1448 = vst [vmem:[%s248_s6] sm:$0xff] %v1446_v35 }
 0x149 PF: > { %s15_s17 = sadd.s32 1, %s2123_s17   ;;  %s2477_s15 = smov %s2119_s16 }
 0x14a   : > { %p12_p6 = scmp.ge.s32.totalorder %s15_s17, 4   ;;  %s2478_s16 = smov %s2480_s18 }
 0x14c   :  { %14 = sbr.rel (!%p12_p6) target bundleno = 2 (0x2), region = 86 }

// kernel: _lambda_.10
= control target key start
LH: loop header
LB: loop body
LE: loop exit
PB: predicated region body
PF: predicated region fallthrough
CT: control target
= control target key end

     0   :  { %s330_s12 = smov 0   ;;  %s353_s0 = inlined_call_operand.vmem [shape: bf16[32,128], index: 0, kind: input, shape index: {}, may-alias: {0,3}]   ;;  %s354_s1 = inlined_call_operand.vmem [shape: f32[1,128], index: 1, kind: input, shape index: {}]   ;;  %s355_s2 = inlined_call_operand.vmem [shape: f32[1,128], index: 2, kind: input, shape index: {}]   ;;  %s356_s3 = inlined_call_operand.vmem [shape: bf16[32,128], index: 3, kind: output, shape index: {}, may-alias: {0,3}]  }
   0x1 LB: > { %s268_s13 = sadd.s32 4294967295, %s308_s12   ;;  %p272_p0 = scmp.ge.s32.totalorder %s308_s12, 1  ;;  %s308_s12 = sphi %s330_s12, %s13_s12  }
   0x2   : > { %p138_p1 = scmp.lt.s32.totalorder %s308_s12, 3 }
   0x4   : > { %p139_p2 = pnand %p272_p0, %p138_p1 }
   0x5   : > { %s273_s14 = sshll.u32 (!%p139_p2), %s268_s13, 1 }
   0x6   : > { %142 = sbr.rel (%p139_p2) target bundleno = 27 (0x1b), region = 32  ;;  %p163_p3 = scmp.lt.s32.totalorder (!%p139_p2), %s273_s14, 3 }
   0xb   : > { %s358_s14 = smov (!%p163_p3, %s273_s14), 3  ;;  %v277_v1 = vld [vmem:[%s354_s1] ss:$0 sm:$0xff] }
   0xc   : > { %s274_s15 = sshll.u32 %s358_s14, 2  ;;  %v278_v4 = vld [vmem:[%s355_s2] ss:$0 sm:$0xff] }
   0xd   : > { %s166_s18 = scalar_lea.vmem %s353_s0, %s274_s15  ;;  %s172_s25 = scalar_lea.vmem %s356_s3, %s274_s15 }
   0xe   : > { %v286_v0 = vld [vmem:[%s166_s18] sm:$0xff]  }
   0xf   : > { %v287_v2 = vunpack.c.l.bf16 %v286_v0  ;;  %v288_v3 = vunpack.c.h.bf16 %v286_v0 }
  0x11   : > { %v185_v5 = vmul.f32 %v287_v2, %v277_v1  ;;  %v186_v6 = vmul.f32 %v288_v3, %v277_v1 }
  0x13   : > { %v194_v7 = vadd.f32 %v278_v4, %v185_v5  ;;  %v195_v8 = vadd.f32 %v278_v4, %v186_v6 }
  0x15   : > { %vm196_vm0 = vcmp.ge.f32.partialorder %v194_v7, 0.0  ;;  %vm197_vm1 = vcmp.ge.f32.partialorder %v195_v8, 0.0  ;;  %v198_v9 = vmul.f32 0.2, %v194_v7  ;;  %v199_v10 = vmul.f32 0.2, %v195_v8 }
  0x17   : > { %v200_v11 = vsel %vm196_vm0, %v194_v7, %v198_v9  ;;  %v201_v12 = vsel %vm197_vm1, %v195_v8, %v199_v10 }
  0x18   : > { %v292_v13 = vpack.c.bf16 %v201_v12, %v200_v11 }
  0x1a   : > { %293 = vst [vmem:[%s172_s25] sm:$0xff] %v292_v13  }
  0x1b PF: > { %s13_s12 = sadd.s32 1, %s308_s12  }
  0x1c   : > { %p10_p4 = scmp.ge.s32.totalorder %s13_s12, 4  }
  0x1e   :  { %12 = sbr.rel (!%p10_p4) target bundleno = 1 (0x1), region = 62 }

// kernel: _lambda_.11
= control target key start
LH: loop header
LB: loop body
LE: loop exit
PB: predicated region body
PF: predicated region fallthrough
CT: control target
= control target key end

     0   :  { %s2406_s0 = inlined_call_operand.vmem [shape: bf16[16,2048], index: 0, kind: input, shape index: {}]   ;;  %s2407_s1 = inlined_call_operand.vmem [shape: bf16[2048,128], index: 1, kind: input, shape index: {}]   ;;  %s2408_s2 = inlined_call_operand.hbm [shape: f32[1,128], index: 2, kind: output, shape index: {}]  }
   0x1   :  { %v1805_v0 = vld [vmem:[%s2407_s1 + $0x78] sm:$0xff]   ;;  %v1809_v4 = vld [vmem:[%s2407_s1 + $0x70] sm:$0xff]   ;;  %v1813_v8 = vld [vmem:[%s2407_s1 + $0x68] sm:$0xff]  }
   0x2   :  { %v1806_v1 = vld [vmem:[%s2407_s1 + $0xf8] sm:$0xff]   ;;  %1628 = vmatprep.subr.bf16.mxu0 %v1805_v0  ;;  %v1810_v5 = vld [vmem:[%s2407_s1 + $0xf0] sm:$0xff]   ;;  %v1814_v9 = vld [vmem:[%s2407_s1 + $0xe8] sm:$0xff]  }
   0x3   :  { %v1807_v2 = vld [vmem:[%s2407_s1 + $0x38] sm:$0xff]   ;;  %1650 = vmatprep.subr.bf16.mxu1 %v1806_v1  ;;  %v1811_v6 = vld [vmem:[%s2407_s1 + $0x30] sm:$0xff]   ;;  %v1815_v10 = vld [vmem:[%s2407_s1 + $0x28] sm:$0xff]  }
   0x4   :  { %v1808_v3 = vld [vmem:[%s2407_s1 + $0xb8] sm:$0xff]   ;;  %1629 = vmatpush3.bf16.msra.mxu0 %v1807_v2  ;;  %v1812_v7 = vld [vmem:[%s2407_s1 + $0xb0] sm:$0xff]   ;;  %v1816_v11 = vld [vmem:[%s2407_s1 + $0xa8] sm:$0xff]  }
   0x5   :  { %1651 = vmatpush3.bf16.msra.mxu1 %v1808_v3  ;;  %1630 = vmatprep.subr.bf16.mxu0 %v1809_v4  ;;  %v1817_v12 = vld [vmem:[%s2407_s1 + $0x60] sm:$0xff]   ;;  %v1821_v16 = vld [vmem:[%s2407_s1 + $0x58] sm:$0xff]   ;;  %v1825_v20 = vld [vmem:[%s2407_s1 + $0x50] sm:$0xff]  }
   0x6   :  { %1652 = vmatprep.subr.bf16.mxu1 %v1810_v5  ;;  %v1818_v13 = vld [vmem:[%s2407_s1 + $0xe0] sm:$0xff]   ;;  %v1822_v17 = vld [vmem:[%s2407_s1 + $0xd8] sm:$0xff]   ;;  %v1826_v21 = vld [vmem:[%s2407_s1 + $0xd0] sm:$0xff]  }
   0x7   :  { %v1819_v14 = vld [vmem:[%s2407_s1 + $0x20] sm:$0xff]   ;;  %v1823_v18 = vld [vmem:[%s2407_s1 + $0x18] sm:$0xff]   ;;  %v1827_v22 = vld [vmem:[%s2407_s1 + $0x10] sm:$0xff]  }
   0x8   :  { %1631 = vmatpush3.bf16.msra.mxu0 %v1811_v6  ;;  %v1820_v15 = vld [vmem:[%s2407_s1 + $0xa0] sm:$0xff]   ;;  %v1824_v19 = vld [vmem:[%s2407_s1 + $0x98] sm:$0xff]   ;;  %v1828_v23 = vld [vmem:[%s2407_s1 + $0x90] sm:$0xff]  }
   0x9   :  { %1653 = vmatpush3.bf16.msra.mxu1 %v1812_v7  ;;  %1632 = vmatprep.subr.bf16.mxu0 %v1813_v8  ;;  %v1829_v24 = vld [vmem:[%s2407_s1 + $0x48] sm:$0xff]   ;;  %v1833_v28 = vld [vmem:[%s2407_s1 + $0x40] sm:$0xff]   ;;  %v1837_v40 = vld [vmem:[%s2407_s1 + $0x178] sm:$0xff]  }
   0xa   :  { %1654 = vmatprep.subr.bf16.mxu1 %v1814_v9  ;;  %v1830_v25 = vld [vmem:[%s2407_s1 + $0xc8] sm:$0xff]   ;;  %v1834_v29 = vld [vmem:[%s2407_s1 + $0xc0] sm:$0xff]   ;;  %v1838_v41 = vld [vmem:[%s2407_s1 + $0x1f8] sm:$0xff]  }
   0xb   :  { %v1831_v26 = vld [vmem:[%s2407_s1 + $0x8] sm:$0xff]   ;;  %v1835_v30 = vld [vmem:[%s2407_s1] sm:$0xff]   ;;  %v1839_v42 = vld [vmem:[%s2407_s1 + $0x138] sm:$0xff]  }
   0xc   :  { %1633 = vmatpush3.bf16.msra.mxu0 %v1815_v10  ;;  %v1832_v27 = vld [vmem:[%s2407_s1 + $0x88] sm:$0xff]   ;;  %v1836_v31 = vld [vmem:[%s2407_s1 + $0x80] sm:$0xff]   ;;  %v1840_v43 = vld [vmem:[%s2407_s1 + $0x1b8] sm:$0xff]  }
   0xd   :  { %1655 = vmatpush3.bf16.msra.mxu1 %v1816_v11  ;;  %1634 = vmatprep.subr.bf16.mxu0 %v1817_v12  ;;  %v13_v32 = vld [vmem:[%s2406_s0] sm:$0xff]  ;;  %v14_v34 = vld [vmem:[%s2406_s0 + $0x8] sm:$0xff]  ;;  %v1841_v44 = vld [vmem:[%s2407_s1 + $0x170] sm:$0xff]  }
   0xe   :  { %1656 = vmatprep.subr.bf16.mxu1 %v1818_v13  ;;  %v21_v33 = vld [vmem:[%s2406_s0 + $0x40] sm:$0xff]  ;;  %v22_v37 = vld [vmem:[%s2406_s0 + $0x48] sm:$0xff]  ;;  %v1842_v45 = vld [vmem:[%s2407_s1 + $0x1f0] sm:$0xff]  }
   0xf   :  { %v1484_v35 = vcombine.low %v13_v32, %v21_v33  ;;  %v1485_v36 = vcombine.high %v13_v32, %v21_v33  ;;  %v1486_v38 = vcombine.low %v14_v34, %v22_v37  ;;  %v1487_v39 = vcombine.high %v14_v34, %v22_v37  ;;  %v1843_v46 = vld [vmem:[%s2407_s1 + $0x130] sm:$0xff]   ;;  %v1845_v48 = vld [vmem:[%s2407_s1 + $0x168] sm:$0xff]   ;;  %v1849_v52 = vld [vmem:[%s2407_s1 + $0x160] sm:$0xff]  }
  0x10   :  { %1635 = vmatpush3.bf16.msra.mxu0 %v1819_v14  ;;  %v1844_v47 = vld [vmem:[%s2407_s1 + $0x1b0] sm:$0xff]   ;;  %v1846_v49 = vld [vmem:[%s2407_s1 + $0x1e8] sm:$0xff]   ;;  %v1850_v53 = vld [vmem:[%s2407_s1 + $0x1e0] sm:$0xff]  }
  0x11   :  { %1657 = vmatpush3.bf16.msra.mxu1 %v1820_v15  ;;  %1636 = vmatprep.subr.bf16.mxu0 %v1821_v16  ;;  %v1847_v50 = vld [vmem:[%s2407_s1 + $0x128] sm:$0xff]   ;;  %v1851_v54 = vld [vmem:[%s2407_s1 + $0x120] sm:$0xff]   ;;  %v1853_v56 = vld [vmem:[%s2407_s1 + $0x158] sm:$0xff]  }
  0x12   :  { %1658 = vmatprep.subr.bf16.mxu1 %v1822_v17  ;;  %1165 = vmatprep.mubr.bf16.mxu0 %v1485_v36  ;;  %v1848_v51 = vld [vmem:[%s2407_s1 + $0x1a8] sm:$0xff]   ;;  %v1852_v55 = vld [vmem:[%s2407_s1 + $0x1a0] sm:$0xff]   ;;  %v1854_v57 = vld [vmem:[%s2407_s1 + $0x1d8] sm:$0xff]  }
  0x13   :  { %1206 = vmatprep.mubr.bf16.mxu1 %v1487_v39  ;;  %v1855_v58 = vld [vmem:[%s2407_s1 + $0x118] sm:$0xff]   ;;  %v1857_v60 = vld [vmem:[%s2407_s1 + $0x150] sm:$0xff]   ;;  %v1861_v0 = vld [vmem:[%s2407_s1 + $0x148] sm:$0xff]  }
  0x14   :  { %1637 = vmatpush3.bf16.msra.mxu0 %v1823_v18  ;;  %v1856_v59 = vld [vmem:[%s2407_s1 + $0x198] sm:$0xff]   ;;  %v1858_v61 = vld [vmem:[%s2407_s1 + $0x1d0] sm:$0xff]   ;;  %v1862_v1 = vld [vmem:[%s2407_s1 + $0x1c8] sm:$0xff]  }
  0x15   :  { %1659 = vmatpush3.bf16.msra.mxu1 %v1824_v19  ;;  %1638 = vmatprep.subr.bf16.mxu0 %v1825_v20  ;;  %v1859_v62 = vld [vmem:[%s2407_s1 + $0x110] sm:$0xff]   ;;  %v1863_v2 = vld [vmem:[%s2407_s1 + $0x108] sm:$0xff]   ;;  %v1865_v4 = vld [vmem:[%s2407_s1 + $0x140] sm:$0xff]  }
  0x16   :  { %1660 = vmatprep.subr.bf16.mxu1 %v1826_v21  ;;  %v1860_v63 = vld [vmem:[%s2407_s1 + $0x190] sm:$0xff]   ;;  %v1864_v3 = vld [vmem:[%s2407_s1 + $0x188] sm:$0xff]   ;;  %v1866_v5 = vld [vmem:[%s2407_s1 + $0x1c0] sm:$0xff]  }
  0x17   :  { %v1867_v6 = vld [vmem:[%s2407_s1 + $0x100] sm:$0xff]   ;;  %v15_v8 = vld [vmem:[%s2406_s0 + $0x10] sm:$0xff]  ;;  %v16_v12 = vld [vmem:[%s2406_s0 + $0x18] sm:$0xff] }
  0x18   :  { %1639 = vmatpush3.bf16.msra.mxu0 %v1827_v22  ;;  %v1868_v7 = vld [vmem:[%s2407_s1 + $0x180] sm:$0xff]   ;;  %v23_v9 = vld [vmem:[%s2406_s0 + $0x50] sm:$0xff]  ;;  %v24_v13 = vld [vmem:[%s2406_s0 + $0x58] sm:$0xff] }
  0x19   :  { %1661 = vmatpush3.bf16.msra.mxu1 %v1828_v23  ;;  %1640 = vmatprep.subr.bf16.mxu0 %v1829_v24  ;;  %v1488_v10 = vcombine.low %v15_v8, %v23_v9  ;;  %v1489_v11 = vcombine.high %v15_v8, %v23_v9  ;;  %v1490_v14 = vcombine.low %v16_v12, %v24_v13  ;;  %v1869_v16 = vld [vmem:[%s2407_s1 + $0x278] sm:$0xff]   ;;  %v1873_v20 = vld [vmem:[%s2407_s1 + $0x270] sm:$0xff]   ;;  %v1877_v24 = vld [vmem:[%s2407_s1 + $0x268] sm:$0xff]  }
  0x1a   :  { %1662 = vmatprep.subr.bf16.mxu1 %v1830_v25  ;;  %v1491_v15 = vcombine.high %v16_v12, %v24_v13  ;;  %v1870_v17 = vld [vmem:[%s2407_s1 + $0x2f8] sm:$0xff]   ;;  %v1874_v21 = vld [vmem:[%s2407_s1 + $0x2f0] sm:$0xff]   ;;  %v1878_v25 = vld [vmem:[%s2407_s1 + $0x2e8] sm:$0xff]  }
  0x1b   :  { %v1871_v18 = vld [vmem:[%s2407_s1 + $0x238] sm:$0xff]   ;;  %v1875_v22 = vld [vmem:[%s2407_s1 + $0x230] sm:$0xff]  }
  0x1c   :  { %1641 = vmatpush3.bf16.msra.mxu0 %v1831_v26  ;;  %v1872_v19 = vld [vmem:[%s2407_s1 + $0x2b8] sm:$0xff]   ;;  %v1876_v23 = vld [vmem:[%s2407_s1 + $0x2b0] sm:$0xff]   ;;  %v1879_v26 = vld [vmem:[%s2407_s1 + $0x228] sm:$0xff]  }
  0x1d   :  { %1663 = vmatpush3.bf16.msra.mxu1 %v1832_v27  ;;  %1642 = vmatprep.subr.bf16.mxu0 %v1833_v28  ;;  %v1880_v27 = vld [vmem:[%s2407_s1 + $0x2a8] sm:$0xff]   ;;  %v1881_v28 = vld [vmem:[%s2407_s1 + $0x260] sm:$0xff]   ;;  %v1885_v32 = vld [vmem:[%s2407_s1 + $0x258] sm:$0xff]  }
  0x1e   :  { %1664 = vmatprep.subr.bf16.mxu1 %v1834_v29  ;;  %v1882_v29 = vld [vmem:[%s2407_s1 + $0x2e0] sm:$0xff]   ;;  %v1886_v33 = vld [vmem:[%s2407_s1 + $0x2d8] sm:$0xff]   ;;  %v1889_v36 = vld [vmem:[%s2407_s1 + $0x250] sm:$0xff]  }
  0x1f   :  { %v1887_v34 = vld [vmem:[%s2407_s1 + $0x218] sm:$0xff]   ;;  %v1890_v37 = vld [vmem:[%s2407_s1 + $0x2d0] sm:$0xff]  }
  0x20   :  { %1643 = vmatpush3.bf16.msra.mxu0 %v1835_v30  ;;  %v1883_v30 = vld [vmem:[%s2407_s1 + $0x220] sm:$0xff]   ;;  %v1892_v39 = vld [vmem:[%s2407_s1 + $0x290] sm:$0xff]   ;;  %v1917_v8 = vld [vmem:[%s2407_s1 + $0x358] sm:$0xff]  }
  0x21   :  { %1665 = vmatpush3.bf16.msra.mxu1 %v1836_v31  ;;  %1672 = vmatprep.subr.bf16.mxu0 %v1837_v40  ;;  %v1884_v31 = vld [vmem:[%s2407_s1 + $0x2a0] sm:$0xff]   ;;  %v1893_v40 = vld [vmem:[%s2407_s1 + $0x248] sm:$0xff]   ;;  %v1918_v9 = vld [vmem:[%s2407_s1 + $0x3d8] sm:$0xff]  }
  0x22   :  { %1694 = vmatprep.subr.bf16.mxu1 %v1838_v41  ;;  %v1894_v41 = vld [vmem:[%s2407_s1 + $0x2c8] sm:$0xff]   ;;  %v1921_v12 = vld [vmem:[%s2407_s1 + $0x350] sm:$0xff]  }
  0x23   :  { %1166 = vmatmul.mubr.bf16.vlgmr.msra.gmra.mxu0 %v1484_v35  ;;  %v1888_v35 = vld [vmem:[%s2407_s1 + $0x298] sm:$0xff]   ;;  %v1922_v13 = vld [vmem:[%s2407_s1 + $0x3d0] sm:$0xff]  }
  0x24   :  { %1207 = vmatmul.mubr.bf16.vlgmr.msra.gmra.mxu1 %v1486_v38  ;;  %1673 = vmatpush3.bf16.msra.mxu0 %v1839_v42  ;;  %v1891_v38 = vld [vmem:[%s2407_s1 + $0x210] sm:$0xff]   ;;  %v1895_v42 = vld [vmem:[%s2407_s1 + $0x208] sm:$0xff]  }
  0x25   :  { %1695 = vmatpush3.bf16.msra.mxu1 %v1840_v43  ;;  %1674 = vmatprep.subr.bf16.mxu0 %v1841_v44  ;;  %v1896_v43 = vld [vmem:[%s2407_s1 + $0x288] sm:$0xff]   ;;  %v1897_v44 = vld [vmem:[%s2407_s1 + $0x240] sm:$0xff]  }
  0x26   :  { %1696 = vmatprep.subr.bf16.mxu1 %v1842_v45  ;;  %1247 = vmatprep.mubr.bf16.mxu0 %v1489_v11  ;;  %v1898_v45 = vld [vmem:[%s2407_s1 + $0x2c0] sm:$0xff]   ;;  %v1920_v11 = vld [vmem:[%s2407_s1 + $0x398] sm:$0xff]  }
  0x27   :  { %1288 = vmatprep.mubr.bf16.mxu1 %v1491_v15  ;;  %v1924_v15 = vld [vmem:[%s2407_s1 + $0x390] sm:$0xff]  }
  0x28   :  { %1675 = vmatpush3.bf16.msra.mxu0 %v1843_v46  ;;  %v1899_v46 = vld [vmem:[%s2407_s1 + $0x200] sm:$0xff]  }
  0x29   :  { %1697 = vmatpush3.bf16.msra.mxu1 %v1844_v47  ;;  %1676 = vmatprep.subr.bf16.mxu0 %v1845_v48  ;;  %v1900_v47 = vld [vmem:[%s2407_s1 + $0x280] sm:$0xff]  }
  0x2a   :  { %1698 = vmatprep.subr.bf16.mxu1 %v1846_v49  ;;  %v17_v48 = vld [vmem:[%s2406_s0 + $0x20] sm:$0xff] }
  0x2b   :  { %v25_v49 = vld [vmem:[%s2406_s0 + $0x60] sm:$0xff] }
  0x2c   :  { %1677 = vmatpush3.bf16.msra.mxu0 %v1847_v50  ;;  %v18_v50 = vld [vmem:[%s2406_s0 + $0x28] sm:$0xff] }
  0x2d   :  { %1699 = vmatpush3.bf16.msra.mxu1 %v1848_v51  ;;  %1678 = vmatprep.subr.bf16.mxu0 %v1849_v52  ;;  %v26_v51 = vld [vmem:[%s2406_s0 + $0x68] sm:$0xff]  ;;  %v1492_v52 = vcombine.low %v17_v48, %v25_v49 }
  0x2e   :  { %1700 = vmatprep.subr.bf16.mxu1 %v1850_v53  ;;  %v1493_v53 = vcombine.high %v17_v48, %v25_v49 }
  0x30   :  { %1679 = vmatpush3.bf16.msra.mxu0 %v1851_v54  ;;  %v1494_v54 = vcombine.low %v18_v50, %v26_v51 }
  0x31   :  { %1701 = vmatpush3.bf16.msra.mxu1 %v1852_v55  ;;  %1680 = vmatprep.subr.bf16.mxu0 %v1853_v56  ;;  %v1495_v55 = vcombine.high %v18_v50, %v26_v51  ;;  %v1901_v56 = vld [vmem:[%s2407_s1 + $0x378] sm:$0xff]  }
  0x32   :  { %1702 = vmatprep.subr.bf16.mxu1 %v1854_v57  ;;  %v1902_v57 = vld [vmem:[%s2407_s1 + $0x3f8] sm:$0xff]  }
  0x34   :  { %1681 = vmatpush3.bf16.msra.mxu0 %v1855_v58  ;;  %v1903_v58 = vld [vmem:[%s2407_s1 + $0x338] sm:$0xff]  }
  0x35   :  { %1703 = vmatpush3.bf16.msra.mxu1 %v1856_v59  ;;  %1682 = vmatprep.subr.bf16.mxu0 %v1857_v60  ;;  %v1904_v59 = vld [vmem:[%s2407_s1 + $0x3b8] sm:$0xff]   ;;  %v1905_v60 = vld [vmem:[%s2407_s1 + $0x370] sm:$0xff]  }
  0x36   :  { %1704 = vmatprep.subr.bf16.mxu1 %v1858_v61  ;;  %v1906_v61 = vld [vmem:[%s2407_s1 + $0x3f0] sm:$0xff]  }
  0x38   :  { %1683 = vmatpush3.bf16.msra.mxu0 %v1859_v62  ;;  %v1907_v62 = vld [vmem:[%s2407_s1 + $0x330] sm:$0xff]  }
  0x39   :  { %1705 = vmatpush3.bf16.msra.mxu1 %v1860_v63  ;;  %1684 = vmatprep.subr.bf16.mxu0 %v1861_v0  ;;  %v1908_v63 = vld [vmem:[%s2407_s1 + $0x3b0] sm:$0xff]   ;;  %v1909_v0 = vld [vmem:[%s2407_s1 + $0x368] sm:$0xff]  }
  0x3a   :  { %1706 = vmatprep.subr.bf16.mxu1 %v1862_v1  ;;  %v1910_v1 = vld [vmem:[%s2407_s1 + $0x3e8] sm:$0xff]  }
  0x3c   :  { %1685 = vmatpush3.bf16.msra.mxu0 %v1863_v2  ;;  %v1911_v2 = vld [vmem:[%s2407_s1 + $0x328] sm:$0xff]  }
  0x3d   :  { %1707 = vmatpush3.bf16.msra.mxu1 %v1864_v3  ;;  %1686 = vmatprep.subr.bf16.mxu0 %v1865_v4  ;;  %v1912_v3 = vld [vmem:[%s2407_s1 + $0x3a8] sm:$0xff]   ;;  %v1913_v4 = vld [vmem:[%s2407_s1 + $0x360] sm:$0xff]  }
  0x3e   :  { %1708 = vmatprep.subr.bf16.mxu1 %v1866_v5  ;;  %v1914_v5 = vld [vmem:[%s2407_s1 + $0x3e0] sm:$0xff]  }
  0x40   :  { %1687 = vmatpush3.bf16.msra.mxu0 %v1867_v6  ;;  %v1915_v6 = vld [vmem:[%s2407_s1 + $0x320] sm:$0xff]  }
  0x41   :  { %1709 = vmatpush3.bf16.msra.mxu1 %v1868_v7  ;;  %1716 = vmatprep.subr.bf16.mxu0 %v1869_v16  ;;  %v1916_v7 = vld [vmem:[%s2407_s1 + $0x3a0] sm:$0xff]   ;;  %v1925_v16 = vld [vmem:[%s2407_s1 + $0x348] sm:$0xff]  }
  0x42   :  { %1738 = vmatprep.subr.bf16.mxu1 %v1870_v17  ;;  %v1926_v17 = vld [vmem:[%s2407_s1 + $0x3c8] sm:$0xff]  }
  0x43   :  { %1248 = vmatmul.mubr.bf16.vlgmr.msra.gmra.mxu0 %v1488_v10  ;;  %v1919_v10 = vld [vmem:[%s2407_s1 + $0x318] sm:$0xff]  }
  0x44   :  { %1289 = vmatmul.mubr.bf16.vlgmr.msra.gmra.mxu1 %v1490_v14  ;;  %1717 = vmatpush3.bf16.msra.mxu0 %v1871_v18  ;;  %v1923_v14 = vld [vmem:[%s2407_s1 + $0x310] sm:$0xff]   ;;  %v1927_v18 = vld [vmem:[%s2407_s1 + $0x308] sm:$0xff]  }
  0x45   :  { %1739 = vmatpush3.bf16.msra.mxu1 %v1872_v19  ;;  %1718 = vmatprep.subr.bf16.mxu0 %v1873_v20  ;;  %v1928_v19 = vld [vmem:[%s2407_s1 + $0x388] sm:$0xff]   ;;  %v1929_v20 = vld [vmem:[%s2407_s1 + $0x340] sm:$0xff]  }
  0x46   :  { %1740 = vmatprep.subr.bf16.mxu1 %v1874_v21  ;;  %1329 = vmatprep.mubr.bf16.mxu0 %v1493_v53  ;;  %v1930_v21 = vld [vmem:[%s2407_s1 + $0x3c0] sm:$0xff]  }
  0x47   :  { %1370 = vmatprep.mubr.bf16.mxu1 %v1495_v55 }
  0x48   :  { %1719 = vmatpush3.bf16.msra.mxu0 %v1875_v22  ;;  %v1931_v22 = vld [vmem:[%s2407_s1 + $0x300] sm:$0xff]  }
  0x49   :  { %1741 = vmatpush3.bf16.msra.mxu1 %v1876_v23  ;;  %1720 = vmatprep.subr.bf16.mxu0 %v1877_v24  ;;  %v1932_v23 = vld [vmem:[%s2407_s1 + $0x380] sm:$0xff]   ;;  %v19_v24 = vld [vmem:[%s2406_s0 + $0x30] sm:$0xff] }
  0x4a   :  { %1742 = vmatprep.subr.bf16.mxu1 %v1878_v25  ;;  %v27_v25 = vld [vmem:[%s2406_s0 + $0x70] sm:$0xff] }
  0x4c   :  { %1721 = vmatpush3.bf16.msra.mxu0 %v1879_v26  ;;  %v20_v26 = vld [vmem:[%s2406_s0 + $0x38] sm:$0xff] }
  0x4d   :  { %1743 = vmatpush3.bf16.msra.mxu1 %v1880_v27  ;;  %1722 = vmatprep.subr.bf16.mxu0 %v1881_v28  ;;  %v1496_v27 = vcombine.low %v19_v24, %v27_v25  ;;  %v1497_v28 = vcombine.high %v19_v24, %v27_v25 }
  0x4e   :  { %1744 = vmatprep.subr.bf16.mxu1 %v1882_v29  ;;  %v28_v29 = vld [vmem:[%s2406_s0 + $0x78] sm:$0xff] }
  0x50   :  { %1723 = vmatpush3.bf16.msra.mxu0 %v1883_v30 }
  0x51   :  { %1745 = vmatpush3.bf16.msra.mxu1 %v1884_v31  ;;  %1724 = vmatprep.subr.bf16.mxu0 %v1885_v32 }
  0x52   :  { %1746 = vmatprep.subr.bf16.mxu1 %v1886_v33 }
  0x54   :  { %1725 = vmatpush3.bf16.msra.mxu0 %v1887_v34 }
  0x55   :  { %1747 = vmatpush3.bf16.msra.mxu1 %v1888_v35  ;;  %1726 = vmatprep.subr.bf16.mxu0 %v1889_v36 }
  0x56   :  { %1748 = vmatprep.subr.bf16.mxu1 %v1890_v37 }
  0x58   :  { %1727 = vmatpush3.bf16.msra.mxu0 %v1891_v38 }
  0x59   :  { %1749 = vmatpush3.bf16.msra.mxu1 %v1892_v39  ;;  %1728 = vmatprep.subr.bf16.mxu0 %v1893_v40 }
  0x5a   :  { %1750 = vmatprep.subr.bf16.mxu1 %v1894_v41 }
  0x5c   :  { %1729 = vmatpush3.bf16.msra.mxu0 %v1895_v42 }
  0x5d   :  { %1751 = vmatpush3.bf16.msra.mxu1 %v1896_v43  ;;  %1730 = vmatprep.subr.bf16.mxu0 %v1897_v44 }
  0x5e   :  { %1752 = vmatprep.subr.bf16.mxu1 %v1898_v45 }
  0x60   :  { %1731 = vmatpush3.bf16.msra.mxu0 %v1899_v46 }
  0x61   :  { %1753 = vmatpush3.bf16.msra.mxu1 %v1900_v47  ;;  %1760 = vmatprep.subr.bf16.mxu0 %v1901_v56 }
  0x62   :  { %1782 = vmatprep.subr.bf16.mxu1 %v1902_v57 }
  0x63   :  { %1330 = vmatmul.mubr.bf16.vlgmr.msra.gmra.mxu0 %v1492_v52 }
  0x64   :  { %1371 = vmatmul.mubr.bf16.vlgmr.msra.gmra.mxu1 %v1494_v54  ;;  %1761 = vmatpush3.bf16.msra.mxu0 %v1903_v58 }
  0x65   :  { %1783 = vmatpush3.bf16.msra.mxu1 %v1904_v59  ;;  %1762 = vmatprep.subr.bf16.mxu0 %v1905_v60 }
  0x66   :  { %1784 = vmatprep.subr.bf16.mxu1 %v1906_v61 }
  0x68   :  { %1763 = vmatpush3.bf16.msra.mxu0 %v1907_v62 }
  0x69   :  { %1785 = vmatpush3.bf16.msra.mxu1 %v1908_v63  ;;  %1764 = vmatprep.subr.bf16.mxu0 %v1909_v0 }
  0x6a   :  { %1786 = vmatprep.subr.bf16.mxu1 %v1910_v1 }
  0x6c   :  { %1765 = vmatpush3.bf16.msra.mxu0 %v1911_v2 }
  0x6d   :  { %1787 = vmatpush3.bf16.msra.mxu1 %v1912_v3  ;;  %1766 = vmatprep.subr.bf16.mxu0 %v1913_v4 }
  0x6e   :  { %1788 = vmatprep.subr.bf16.mxu1 %v1914_v5 }
  0x70   :  { %1767 = vmatpush3.bf16.msra.mxu0 %v1915_v6 }
  0x71   :  { %1789 = vmatpush3.bf16.msra.mxu1 %v1916_v7  ;;  %1768 = vmatprep.subr.bf16.mxu0 %v1917_v8 }
  0x72   :  { %1790 = vmatprep.subr.bf16.mxu1 %v1918_v9 }
  0x74   :  { %1769 = vmatpush3.bf16.msra.mxu0 %v1919_v10 }
  0x75   :  { %1791 = vmatpush3.bf16.msra.mxu1 %v1920_v11  ;;  %1770 = vmatprep.subr.bf16.mxu0 %v1921_v12 }
  0x76   :  { %1792 = vmatprep.subr.bf16.mxu1 %v1922_v13 }
  0x78   :  { %1771 = vmatpush3.bf16.msra.mxu0 %v1923_v14 }
  0x79   :  { %1793 = vmatpush3.bf16.msra.mxu1 %v1924_v15  ;;  %1772 = vmatprep.subr.bf16.mxu0 %v1925_v16 }
  0x7a   :  { %1794 = vmatprep.subr.bf16.mxu1 %v1926_v17 }
  0x7c   :  { %1773 = vmatpush3.bf16.msra.mxu0 %v1927_v18 }
  0x7d   :  { %1795 = vmatpush3.bf16.msra.mxu1 %v1928_v19  ;;  %1774 = vmatprep.subr.bf16.mxu0 %v1929_v20 }
  0x7e   :  { %1796 = vmatprep.subr.bf16.mxu1 %v1930_v21 }
  0x80   :  { %1775 = vmatpush3.bf16.msra.mxu0 %v1931_v22 }
  0x81   :  { %1797 = vmatpush3.bf16.msra.mxu1 %v1932_v23 }
  0x82   :  { %7 = vsyncpa [#allocation3], 0  ;;  %v1498_v30 = vcombine.low %v20_v26, %v28_v29  ;;  %v1499_v31 = vcombine.high %v20_v26, %v28_v29  ;;  %1411 = vmatprep.mubr.bf16.mxu0 %v1497_v28  ;;  %s1955_s0 = smov [#allocation2]  }
  0x83   :  { %1412 = vmatmul.mubr.bf16.vlgmr.msra.gmra.mxu0 %v1496_v27  ;;  %s1476_s1 = sshll.u32 %s1955_s0, 4  ;;  %s1477_s1 = int_to_ptr.vmem [resolvable:$true] %s1476_s1 }
  0x84   :  { %1452 = vmatprep.mubr.bf16.mxu1 %v1499_v31  ;;  %s1933_s17 = scalar_lea.vmem %s1477_s1, 16  ;;  %s1937_s18 = scalar_lea.vmem %s1477_s1, 32 }
  0x85   :  { %1453 = vmatmul.mubr.bf16.vlgmr.msra.gmra.mxu1 %v1498_v30  ;;  %p1934_p0 = scmp.ne.s32.totalorder %s1477_s1, %s1933_s17  ;;  %p1938_p1 = scmp.lt.s32.totalorder %s1477_s1, %s1477_s1 }
  0x86   :  { %p1939_p2 = scmp.lt.s32.totalorder %s1937_s18, %s1933_s17 }
  0x88   :  { %p1940_p3 = por %p1939_p2, %p1938_p1 }
  0x8a   :  { %p1941_p4 = pnand %p1940_p3, %p1934_p0 }
  0xe3   :  { %v1644_v32 = vpop.f32.mrf.mxu0 }
  0xe4   :  { %v1666_v33 = vpop.f32.mrf.mxu1 }
  0xe5   :  { %v1645_v34 = vpop.f32.mrf.mxu0 }
  0xe6   :  { %v1667_v35 = vpop.f32.mrf.mxu1  ;;  %v1646_v51 = vadd.f32 %v1645_v34, %v1644_v32 }
  0xe7   :  { %v1647_v36 = vpop.f32.mrf.mxu0  ;;  %v1668_v52 = vadd.f32 %v1667_v35, %v1666_v33 }
  0xe8   :  { %v1669_v37 = vpop.f32.mrf.mxu1 }
  0xe9   :  { %v1648_v38 = vpop.f32.mrf.mxu0  ;;  %v1209_v58 = vadd.f32 %v1668_v52, %v1646_v51 }
  0xea   :  { %v1670_v40 = vpop.f32.mrf.mxu1  ;;  %v1649_v53 = vadd.f32 %v1648_v38, %v1647_v36 }
  0xeb   :  { %v1671_v54 = vadd.f32 %v1670_v40, %v1669_v37 }
  0xed   :  { %v1212_v60 = vadd.f32 %v1671_v54, %v1649_v53 }
 0x103   :  { %v1688_v39 = vpop.f32.mrf.mxu0 }
 0x104   :  { %v1710_v41 = vpop.f32.mrf.mxu1 }
 0x105   :  { %v1689_v42 = vpop.f32.mrf.mxu0 }
 0x106   :  { %v1711_v43 = vpop.f32.mrf.mxu1  ;;  %v1690_v55 = vadd.f32 %v1689_v42, %v1688_v39 }
 0x107   :  { %v1691_v44 = vpop.f32.mrf.mxu0  ;;  %v1712_v62 = vadd.f32 %v1711_v43, %v1710_v41 }
 0x108   :  { %v1713_v45 = vpop.f32.mrf.mxu1  ;;  %v1250_v61 = vadd.f32 %v1690_v55, %v1209_v58 }
 0x109   :  { %v1692_v46 = vpop.f32.mrf.mxu0 }
 0x10a   :  { %v1714_v48 = vpop.f32.mrf.mxu1  ;;  %v1693_v59 = vadd.f32 %v1692_v46, %v1691_v44  ;;  %v1291_v3 = vadd.f32 %v1712_v62, %v1250_v61 }
 0x10b   :  { %v1715_v4 = vadd.f32 %v1714_v48, %v1713_v45 }
 0x10c   :  { %v1253_v1 = vadd.f32 %v1693_v59, %v1212_v60 }
 0x10e   :  { %v1294_v8 = vadd.f32 %v1715_v4, %v1253_v1 }
 0x123   :  { %v1732_v47 = vpop.f32.mrf.mxu0 }
 0x124   :  { %v1754_v49 = vpop.f32.mrf.mxu1 }
 0x125   :  { %v1733_v50 = vpop.f32.mrf.mxu0 }
 0x126   :  { %v1755_v56 = vpop.f32.mrf.mxu1  ;;  %v1734_v2 = vadd.f32 %v1733_v50, %v1732_v47 }
 0x127   :  { %v1735_v57 = vpop.f32.mrf.mxu0  ;;  %v1756_v10 = vadd.f32 %v1755_v56, %v1754_v49 }
 0x128   :  { %v1757_v63 = vpop.f32.mrf.mxu1  ;;  %v1332_v9 = vadd.f32 %v1734_v2, %v1291_v3 }
 0x129   :  { %v1736_v0 = vpop.f32.mrf.mxu0 }
 0x12a   :  { %v1737_v5 = vadd.f32 %v1736_v0, %v1735_v57  ;;  %v1758_v6 = vpop.f32.mrf.mxu1  ;;  %v1373_v17 = vadd.f32 %v1756_v10, %v1332_v9 }
 0x12b   :  { %v1759_v18 = vadd.f32 %v1758_v6, %v1757_v63 }
 0x12c   :  { %v1335_v13 = vadd.f32 %v1737_v5, %v1294_v8 }
 0x12e   :  { %v1376_v21 = vadd.f32 %v1759_v18, %v1335_v13 }
 0x143   :  { %v1776_v7 = vpop.f32.mrf.mxu0 }
 0x145   :  { %v1798_v11 = vpop.f32.mrf.mxu1  ;;  %v1777_v12 = vpop.f32.mrf.mxu0 }
 0x146   :  { %v1778_v14 = vadd.f32 %v1777_v12, %v1776_v7 }
 0x147   :  { %v1799_v15 = vpop.f32.mrf.mxu1  ;;  %v1779_v16 = vpop.f32.mrf.mxu0 }
 0x148   :  { %v1414_v22 = vadd.f32 %v1778_v14, %v1373_v17  ;;  %v1800_v25 = vadd.f32 %v1799_v15, %v1798_v11 }
 0x149   :  { %v1801_v19 = vpop.f32.mrf.mxu1  ;;  %v1780_v20 = vpop.f32.mrf.mxu0 }
 0x14a   :  { %v1781_v23 = vadd.f32 %v1780_v20, %v1779_v16  ;;  %v1455_v28 = vadd.f32 %v1800_v25, %v1414_v22 }
 0x14b   :  { %v1802_v24 = vpop.f32.mrf.mxu1 }
 0x14c   :  { %v1417_v26 = vadd.f32 %v1781_v23, %v1376_v21  ;;  %v1803_v27 = vadd.f32 %v1802_v24, %v1801_v19 }
 0x14e   :  { %v1458_v29 = vadd.f32 %v1803_v27, %v1417_v26 }
 0x150   :  { %v1461_v30 = vadd.f32 %v1458_v29, %v1455_v28 }
 0x152   :  { %v1462_v31 = vrot.slane %v1461_v30, 4 }
 0x154   :  { %v1463_v32 = vadd.f32 %v1462_v31, %v1461_v30 }
 0x156   :  { %v1464_v33 = vrot.slane %v1463_v32, 2 }
 0x158   :  { %v1465_v34 = vadd.f32 %v1464_v33, %v1463_v32 }
 0x15a   :  { %v1466_v35 = vrot.slane %v1465_v34, 1 }
 0x15c   :  { %v1467_v36 = vadd.f32 %v1466_v35, %v1465_v34 }
 0x15e   :  { %v1468_v37 = vmul.f32 0.5, %v1467_v36 }
 0x160   :  { %1469 = vst [vmem:[#allocation2] sm:$0x1] %v1468_v37 }
 0x161   :  { %1944 = shalt.err (!%p1941_p4)
}
 0x162   :  { %1479 = dma.vmem_to_hbm [thread:$0]  %s1477_s1, 16, %s2408_s2, [#allocation3]  }
 0x163   :  { %1953 = dma.done.wait [#allocation3], 16  }
 0x164   :  { %1954 = vsyncadd [#allocation3], 4294967280 }
 0x165   :  { %1483 = vsyncpa [#allocation3], 1 }

// kernel: _lambda_.9
= control target key start
LH: loop header
LB: loop body
LE: loop exit
PB: predicated region body
PF: predicated region fallthrough
CT: control target
= control target key end

     0   :  { %s2400_s15 = smov 0   ;;  %s2402_s16 = smov 0   ;;  %s2850_s0 = inlined_call_operand.vmem [shape: bf16[32,2048], index: 0, kind: input, shape index: {}]   ;;  %s2851_s1 = inlined_call_operand.vmem [shape: bf16[2048,128], index: 1, kind: input, shape index: {}]   ;;  %s2852_s2 = inlined_call_operand.vmem [shape: bf16[32,128], index: 2, kind: output, shape index: {0}]   ;;  %s2853_s3 = inlined_call_operand.vmem [shape: f32[2,8,128], index: 3, kind: output, shape index: {1}]   ;;  %s2854_s4 = inlined_call_operand.vmem [shape: f32[2,8,128], index: 4, kind: output, shape index: {2}]  }
   0x1   :  { %s2404_s17 = smov 0  }
   0x2 LB: > { %s27_s18 = sadd.s32 1, %s2369_s16  ;;  %p1858_p0 = scmp.ge.s32.totalorder %s2373_s17, 1  ;;  %s2373_s17 = sphi %s2404_s17, %s15_s17   ;;  %s2369_s16 = sphi %s2402_s16, %s2856_s16   ;;  %s2365_s15 = sphi %s2400_s15, %s2855_s15  }
   0x3   : > { %p29_p1 = scmp.ge.s32.totalorder %s27_s18, 2  ;;  %p187_p2 = scmp.lt.s32.totalorder %s2373_s17, 3 }
   0x5   : > { %s2858_s18 = smov (%p29_p1, %s27_s18), 0  ;;  %p188_p3 = pnand %p1858_p0, %p187_p2 }
   0x6   : > { %s1859_s29 = sshll.u32 (!%p188_p3), %s2365_s15, 1  ;;  %p241_p5 = scmp.lt.s32.totalorder (!%p188_p3), %s2365_s15, 1 }
   0x7   : > { %191 = sbr.rel (%p188_p3) target bundleno = 352 (0x160), region = 28  ;;  %p226_p4 = scmp.lt.s32.totalorder (!%p188_p3), %s1859_s29, 3 }
   0xc   : > { %v2223_v0 = vld [vmem:[%s2851_s1 + $0x78] sm:$0xff]   ;;  %v2227_v4 = vld [vmem:[%s2851_s1 + $0x70] sm:$0xff]   ;;  %v2231_v8 = vld [vmem:[%s2851_s1 + $0x68] sm:$0xff]   ;;  %s2860_s29 = smov (!%p226_p4, %s1859_s29), 3  ;;  %s2862_s15 = smov (!%p241_p5, %s2365_s15), 1 }
   0xd   : > { %v2224_v1 = vld [vmem:[%s2851_s1 + $0xf8] sm:$0xff]   ;;  %2022 = vmatprep.subr.bf16.mxu0 %v2223_v0  ;;  %v2228_v5 = vld [vmem:[%s2851_s1 + $0xf0] sm:$0xff]   ;;  %v2232_v9 = vld [vmem:[%s2851_s1 + $0xe8] sm:$0xff]   ;;  %s2014_s5 = sshll.u32 %s2860_s29, 6  ;;  %s1864_s10 = sshll.u32 %s2862_s15, 3 }
   0xe   : > { %v2225_v2 = vld [vmem:[%s2851_s1 + $0x38] sm:$0xff]   ;;  %2044 = vmatprep.subr.bf16.mxu1 %v2224_v1  ;;  %v2229_v6 = vld [vmem:[%s2851_s1 + $0x30] sm:$0xff]   ;;  %v2233_v10 = vld [vmem:[%s2851_s1 + $0x28] sm:$0xff]   ;;  %s2517_s14 = scalar_lea.vmem %s2850_s0, %s2014_s5  ;;  %s244_s21 = scalar_lea.vmem %s2853_s3, %s1864_s10 }
   0xf   : > { %v2226_v3 = vld [vmem:[%s2851_s1 + $0xb8] sm:$0xff]   ;;  %2023 = vmatpush3.bf16.msra.mxu0 %v2225_v2  ;;  %v2230_v7 = vld [vmem:[%s2851_s1 + $0xb0] sm:$0xff]   ;;  %v2234_v11 = vld [vmem:[%s2851_s1 + $0xa8] sm:$0xff]  }
  0x10   : > { %2045 = vmatpush3.bf16.msra.mxu1 %v2226_v3  ;;  %2024 = vmatprep.subr.bf16.mxu0 %v2227_v4  ;;  %v2235_v12 = vld [vmem:[%s2851_s1 + $0x60] sm:$0xff]   ;;  %v2239_v16 = vld [vmem:[%s2851_s1 + $0x58] sm:$0xff]   ;;  %v2243_v20 = vld [vmem:[%s2851_s1 + $0x50] sm:$0xff]  }
  0x11   : > { %2046 = vmatprep.subr.bf16.mxu1 %v2228_v5  ;;  %v2236_v13 = vld [vmem:[%s2851_s1 + $0xe0] sm:$0xff]   ;;  %v2240_v17 = vld [vmem:[%s2851_s1 + $0xd8] sm:$0xff]   ;;  %v2244_v21 = vld [vmem:[%s2851_s1 + $0xd0] sm:$0xff]  }
  0x12   : > { %v2237_v14 = vld [vmem:[%s2851_s1 + $0x20] sm:$0xff]   ;;  %v2241_v18 = vld [vmem:[%s2851_s1 + $0x18] sm:$0xff]   ;;  %v2245_v22 = vld [vmem:[%s2851_s1 + $0x10] sm:$0xff]  }
  0x13   : > { %2025 = vmatpush3.bf16.msra.mxu0 %v2229_v6  ;;  %v2238_v15 = vld [vmem:[%s2851_s1 + $0xa0] sm:$0xff]   ;;  %v2242_v19 = vld [vmem:[%s2851_s1 + $0x98] sm:$0xff]   ;;  %v2246_v23 = vld [vmem:[%s2851_s1 + $0x90] sm:$0xff]  }
  0x14   : > { %2047 = vmatpush3.bf16.msra.mxu1 %v2230_v7  ;;  %2026 = vmatprep.subr.bf16.mxu0 %v2231_v8  ;;  %v2247_v24 = vld [vmem:[%s2851_s1 + $0x48] sm:$0xff]   ;;  %v2251_v28 = vld [vmem:[%s2851_s1 + $0x40] sm:$0xff]   ;;  %v2255_v40 = vld [vmem:[%s2851_s1 + $0x178] sm:$0xff]  }
  0x15   : > { %2048 = vmatprep.subr.bf16.mxu1 %v2232_v9  ;;  %v2248_v25 = vld [vmem:[%s2851_s1 + $0xc8] sm:$0xff]   ;;  %v2252_v29 = vld [vmem:[%s2851_s1 + $0xc0] sm:$0xff]   ;;  %v2256_v41 = vld [vmem:[%s2851_s1 + $0x1f8] sm:$0xff]  }
  0x16   : > { %v2249_v26 = vld [vmem:[%s2851_s1 + $0x8] sm:$0xff]   ;;  %v2253_v30 = vld [vmem:[%s2851_s1] sm:$0xff]   ;;  %v2257_v42 = vld [vmem:[%s2851_s1 + $0x138] sm:$0xff]  }
  0x17   : > { %2027 = vmatpush3.bf16.msra.mxu0 %v2233_v10  ;;  %v2250_v27 = vld [vmem:[%s2851_s1 + $0x88] sm:$0xff]   ;;  %v2254_v31 = vld [vmem:[%s2851_s1 + $0x80] sm:$0xff]   ;;  %v2258_v43 = vld [vmem:[%s2851_s1 + $0x1b8] sm:$0xff]  }
  0x18   : > { %2049 = vmatpush3.bf16.msra.mxu1 %v2234_v11  ;;  %2028 = vmatprep.subr.bf16.mxu0 %v2235_v12  ;;  %v256_v32 = vld [vmem:[%s2517_s14] sm:$0xff]  ;;  %v257_v34 = vld [vmem:[%s2517_s14 + $0x8] sm:$0xff]  ;;  %v2259_v44 = vld [vmem:[%s2851_s1 + $0x170] sm:$0xff]  }
  0x19   : > { %2050 = vmatprep.subr.bf16.mxu1 %v2236_v13  ;;  %v264_v33 = vld [vmem:[%s2517_s14 + $0x40] sm:$0xff]  ;;  %v265_v37 = vld [vmem:[%s2517_s14 + $0x48] sm:$0xff]  ;;  %v2260_v45 = vld [vmem:[%s2851_s1 + $0x1f0] sm:$0xff]  }
  0x1a   : > { %v1866_v35 = vcombine.low %v256_v32, %v264_v33  ;;  %v1867_v36 = vcombine.high %v256_v32, %v264_v33  ;;  %v1868_v38 = vcombine.low %v257_v34, %v265_v37  ;;  %v1869_v39 = vcombine.high %v257_v34, %v265_v37  ;;  %v2261_v46 = vld [vmem:[%s2851_s1 + $0x130] sm:$0xff]   ;;  %v2263_v48 = vld [vmem:[%s2851_s1 + $0x168] sm:$0xff]   ;;  %v2267_v52 = vld [vmem:[%s2851_s1 + $0x160] sm:$0xff]  }
  0x1b   : > { %2029 = vmatpush3.bf16.msra.mxu0 %v2237_v14  ;;  %v2262_v47 = vld [vmem:[%s2851_s1 + $0x1b0] sm:$0xff]   ;;  %v2264_v49 = vld [vmem:[%s2851_s1 + $0x1e8] sm:$0xff]   ;;  %v2268_v53 = vld [vmem:[%s2851_s1 + $0x1e0] sm:$0xff]  }
  0x1c   : > { %2051 = vmatpush3.bf16.msra.mxu1 %v2238_v15  ;;  %2030 = vmatprep.subr.bf16.mxu0 %v2239_v16  ;;  %v2265_v50 = vld [vmem:[%s2851_s1 + $0x128] sm:$0xff]   ;;  %v2269_v54 = vld [vmem:[%s2851_s1 + $0x120] sm:$0xff]   ;;  %v2271_v56 = vld [vmem:[%s2851_s1 + $0x158] sm:$0xff]  }
  0x1d   : > { %2052 = vmatprep.subr.bf16.mxu1 %v2240_v17  ;;  %1408 = vmatprep.mubr.bf16.mxu0 %v1867_v36  ;;  %v2266_v51 = vld [vmem:[%s2851_s1 + $0x1a8] sm:$0xff]   ;;  %v2270_v55 = vld [vmem:[%s2851_s1 + $0x1a0] sm:$0xff]   ;;  %v2272_v57 = vld [vmem:[%s2851_s1 + $0x1d8] sm:$0xff]  }
  0x1e   : > { %1449 = vmatprep.mubr.bf16.mxu1 %v1869_v39  ;;  %v2273_v58 = vld [vmem:[%s2851_s1 + $0x118] sm:$0xff]   ;;  %v2275_v60 = vld [vmem:[%s2851_s1 + $0x150] sm:$0xff]   ;;  %v2279_v0 = vld [vmem:[%s2851_s1 + $0x148] sm:$0xff]  }
  0x1f   : > { %2031 = vmatpush3.bf16.msra.mxu0 %v2241_v18  ;;  %v2274_v59 = vld [vmem:[%s2851_s1 + $0x198] sm:$0xff]   ;;  %v2276_v61 = vld [vmem:[%s2851_s1 + $0x1d0] sm:$0xff]   ;;  %v2280_v1 = vld [vmem:[%s2851_s1 + $0x1c8] sm:$0xff]  }
  0x20   : > { %2053 = vmatpush3.bf16.msra.mxu1 %v2242_v19  ;;  %2032 = vmatprep.subr.bf16.mxu0 %v2243_v20  ;;  %v2277_v62 = vld [vmem:[%s2851_s1 + $0x110] sm:$0xff]   ;;  %v2281_v2 = vld [vmem:[%s2851_s1 + $0x108] sm:$0xff]   ;;  %v2283_v4 = vld [vmem:[%s2851_s1 + $0x140] sm:$0xff]  }
  0x21   : > { %2054 = vmatprep.subr.bf16.mxu1 %v2244_v21  ;;  %v2278_v63 = vld [vmem:[%s2851_s1 + $0x190] sm:$0xff]   ;;  %v2282_v3 = vld [vmem:[%s2851_s1 + $0x188] sm:$0xff]   ;;  %v2284_v5 = vld [vmem:[%s2851_s1 + $0x1c0] sm:$0xff]  }
  0x22   : > { %v2285_v6 = vld [vmem:[%s2851_s1 + $0x100] sm:$0xff]   ;;  %v258_v8 = vld [vmem:[%s2517_s14 + $0x10] sm:$0xff]  ;;  %v259_v12 = vld [vmem:[%s2517_s14 + $0x18] sm:$0xff] }
  0x23   : > { %2033 = vmatpush3.bf16.msra.mxu0 %v2245_v22  ;;  %v2286_v7 = vld [vmem:[%s2851_s1 + $0x180] sm:$0xff]   ;;  %v266_v9 = vld [vmem:[%s2517_s14 + $0x50] sm:$0xff]  ;;  %v267_v13 = vld [vmem:[%s2517_s14 + $0x58] sm:$0xff] }
  0x24   : > { %2055 = vmatpush3.bf16.msra.mxu1 %v2246_v23  ;;  %2034 = vmatprep.subr.bf16.mxu0 %v2247_v24  ;;  %v1870_v10 = vcombine.low %v258_v8, %v266_v9  ;;  %v1871_v11 = vcombine.high %v258_v8, %v266_v9  ;;  %v1872_v14 = vcombine.low %v259_v12, %v267_v13  ;;  %v2287_v16 = vld [vmem:[%s2851_s1 + $0x278] sm:$0xff]   ;;  %v2291_v20 = vld [vmem:[%s2851_s1 + $0x270] sm:$0xff]   ;;  %v2295_v24 = vld [vmem:[%s2851_s1 + $0x268] sm:$0xff]  }
  0x25   : > { %2056 = vmatprep.subr.bf16.mxu1 %v2248_v25  ;;  %v1873_v15 = vcombine.high %v259_v12, %v267_v13  ;;  %v2288_v17 = vld [vmem:[%s2851_s1 + $0x2f8] sm:$0xff]   ;;  %v2292_v21 = vld [vmem:[%s2851_s1 + $0x2f0] sm:$0xff]   ;;  %v2296_v25 = vld [vmem:[%s2851_s1 + $0x2e8] sm:$0xff]  }
  0x26   : > { %v2289_v18 = vld [vmem:[%s2851_s1 + $0x238] sm:$0xff]   ;;  %v2293_v22 = vld [vmem:[%s2851_s1 + $0x230] sm:$0xff]  }
  0x27   : > { %2035 = vmatpush3.bf16.msra.mxu0 %v2249_v26  ;;  %v2290_v19 = vld [vmem:[%s2851_s1 + $0x2b8] sm:$0xff]   ;;  %v2294_v23 = vld [vmem:[%s2851_s1 + $0x2b0] sm:$0xff]   ;;  %v2297_v26 = vld [vmem:[%s2851_s1 + $0x228] sm:$0xff]  }
  0x28   : > { %2057 = vmatpush3.bf16.msra.mxu1 %v2250_v27  ;;  %2036 = vmatprep.subr.bf16.mxu0 %v2251_v28  ;;  %v2298_v27 = vld [vmem:[%s2851_s1 + $0x2a8] sm:$0xff]   ;;  %v2299_v28 = vld [vmem:[%s2851_s1 + $0x260] sm:$0xff]   ;;  %v2303_v32 = vld [vmem:[%s2851_s1 + $0x258] sm:$0xff]  }
  0x29   : > { %2058 = vmatprep.subr.bf16.mxu1 %v2252_v29  ;;  %v2300_v29 = vld [vmem:[%s2851_s1 + $0x2e0] sm:$0xff]   ;;  %v2304_v33 = vld [vmem:[%s2851_s1 + $0x2d8] sm:$0xff]   ;;  %v2307_v36 = vld [vmem:[%s2851_s1 + $0x250] sm:$0xff]  }
  0x2a   : > { %v2305_v34 = vld [vmem:[%s2851_s1 + $0x218] sm:$0xff]   ;;  %v2308_v37 = vld [vmem:[%s2851_s1 + $0x2d0] sm:$0xff]  }
  0x2b   : > { %2037 = vmatpush3.bf16.msra.mxu0 %v2253_v30  ;;  %v2301_v30 = vld [vmem:[%s2851_s1 + $0x220] sm:$0xff]   ;;  %v2310_v39 = vld [vmem:[%s2851_s1 + $0x290] sm:$0xff]   ;;  %v2335_v8 = vld [vmem:[%s2851_s1 + $0x358] sm:$0xff]  }
  0x2c   : > { %2059 = vmatpush3.bf16.msra.mxu1 %v2254_v31  ;;  %2066 = vmatprep.subr.bf16.mxu0 %v2255_v40  ;;  %v2302_v31 = vld [vmem:[%s2851_s1 + $0x2a0] sm:$0xff]   ;;  %v2311_v40 = vld [vmem:[%s2851_s1 + $0x248] sm:$0xff]   ;;  %v2336_v9 = vld [vmem:[%s2851_s1 + $0x3d8] sm:$0xff]  }
  0x2d   : > { %2088 = vmatprep.subr.bf16.mxu1 %v2256_v41  ;;  %v2312_v41 = vld [vmem:[%s2851_s1 + $0x2c8] sm:$0xff]   ;;  %v2339_v12 = vld [vmem:[%s2851_s1 + $0x350] sm:$0xff]  }
  0x2e   : > { %1409 = vmatmul.mubr.bf16.vlgmr.msra.gmra.mxu0 %v1866_v35  ;;  %v2306_v35 = vld [vmem:[%s2851_s1 + $0x298] sm:$0xff]   ;;  %v2340_v13 = vld [vmem:[%s2851_s1 + $0x3d0] sm:$0xff]  }
  0x2f   : > { %1450 = vmatmul.mubr.bf16.vlgmr.msra.gmra.mxu1 %v1868_v38  ;;  %2067 = vmatpush3.bf16.msra.mxu0 %v2257_v42  ;;  %v2309_v38 = vld [vmem:[%s2851_s1 + $0x210] sm:$0xff]   ;;  %v2313_v42 = vld [vmem:[%s2851_s1 + $0x208] sm:$0xff]  }
  0x30   : > { %2089 = vmatpush3.bf16.msra.mxu1 %v2258_v43  ;;  %2068 = vmatprep.subr.bf16.mxu0 %v2259_v44  ;;  %v2314_v43 = vld [vmem:[%s2851_s1 + $0x288] sm:$0xff]   ;;  %v2315_v44 = vld [vmem:[%s2851_s1 + $0x240] sm:$0xff]  }
  0x31   : > { %2090 = vmatprep.subr.bf16.mxu1 %v2260_v45  ;;  %1490 = vmatprep.mubr.bf16.mxu0 %v1871_v11  ;;  %v2316_v45 = vld [vmem:[%s2851_s1 + $0x2c0] sm:$0xff]   ;;  %v2338_v11 = vld [vmem:[%s2851_s1 + $0x398] sm:$0xff]  }
  0x32   : > { %1531 = vmatprep.mubr.bf16.mxu1 %v1873_v15  ;;  %v2342_v15 = vld [vmem:[%s2851_s1 + $0x390] sm:$0xff]  }
  0x33   : > { %2069 = vmatpush3.bf16.msra.mxu0 %v2261_v46  ;;  %v2317_v46 = vld [vmem:[%s2851_s1 + $0x200] sm:$0xff]  }
  0x34   : > { %2091 = vmatpush3.bf16.msra.mxu1 %v2262_v47  ;;  %2070 = vmatprep.subr.bf16.mxu0 %v2263_v48  ;;  %v2318_v47 = vld [vmem:[%s2851_s1 + $0x280] sm:$0xff]  }
  0x35   : > { %2092 = vmatprep.subr.bf16.mxu1 %v2264_v49  ;;  %v260_v48 = vld [vmem:[%s2517_s14 + $0x20] sm:$0xff] }
  0x36   : > { %v268_v49 = vld [vmem:[%s2517_s14 + $0x60] sm:$0xff] }
  0x37   : > { %2071 = vmatpush3.bf16.msra.mxu0 %v2265_v50  ;;  %v261_v50 = vld [vmem:[%s2517_s14 + $0x28] sm:$0xff] }
  0x38   : > { %2093 = vmatpush3.bf16.msra.mxu1 %v2266_v51  ;;  %2072 = vmatprep.subr.bf16.mxu0 %v2267_v52  ;;  %v269_v51 = vld [vmem:[%s2517_s14 + $0x68] sm:$0xff]  ;;  %v1874_v52 = vcombine.low %v260_v48, %v268_v49 }
  0x39   : > { %2094 = vmatprep.subr.bf16.mxu1 %v2268_v53  ;;  %v1875_v53 = vcombine.high %v260_v48, %v268_v49 }
  0x3b   : > { %2073 = vmatpush3.bf16.msra.mxu0 %v2269_v54  ;;  %v1876_v54 = vcombine.low %v261_v50, %v269_v51 }
  0x3c   : > { %2095 = vmatpush3.bf16.msra.mxu1 %v2270_v55  ;;  %2074 = vmatprep.subr.bf16.mxu0 %v2271_v56  ;;  %v1877_v55 = vcombine.high %v261_v50, %v269_v51  ;;  %v2319_v56 = vld [vmem:[%s2851_s1 + $0x378] sm:$0xff]  }
  0x3d   : > { %2096 = vmatprep.subr.bf16.mxu1 %v2272_v57  ;;  %v2320_v57 = vld [vmem:[%s2851_s1 + $0x3f8] sm:$0xff]  }
  0x3f   : > { %2075 = vmatpush3.bf16.msra.mxu0 %v2273_v58  ;;  %v2321_v58 = vld [vmem:[%s2851_s1 + $0x338] sm:$0xff]  }
  0x40   : > { %2097 = vmatpush3.bf16.msra.mxu1 %v2274_v59  ;;  %2076 = vmatprep.subr.bf16.mxu0 %v2275_v60  ;;  %v2322_v59 = vld [vmem:[%s2851_s1 + $0x3b8] sm:$0xff]   ;;  %v2323_v60 = vld [vmem:[%s2851_s1 + $0x370] sm:$0xff]  }
  0x41   : > { %2098 = vmatprep.subr.bf16.mxu1 %v2276_v61  ;;  %v2324_v61 = vld [vmem:[%s2851_s1 + $0x3f0] sm:$0xff]  }
  0x43   : > { %2077 = vmatpush3.bf16.msra.mxu0 %v2277_v62  ;;  %v2325_v62 = vld [vmem:[%s2851_s1 + $0x330] sm:$0xff]  }
  0x44   : > { %2099 = vmatpush3.bf16.msra.mxu1 %v2278_v63  ;;  %2078 = vmatprep.subr.bf16.mxu0 %v2279_v0  ;;  %v2326_v63 = vld [vmem:[%s2851_s1 + $0x3b0] sm:$0xff]   ;;  %v2327_v0 = vld [vmem:[%s2851_s1 + $0x368] sm:$0xff]  }
  0x45   : > { %2100 = vmatprep.subr.bf16.mxu1 %v2280_v1  ;;  %v2328_v1 = vld [vmem:[%s2851_s1 + $0x3e8] sm:$0xff]  }
  0x47   : > { %2079 = vmatpush3.bf16.msra.mxu0 %v2281_v2  ;;  %v2329_v2 = vld [vmem:[%s2851_s1 + $0x328] sm:$0xff]  }
  0x48   : > { %2101 = vmatpush3.bf16.msra.mxu1 %v2282_v3  ;;  %2080 = vmatprep.subr.bf16.mxu0 %v2283_v4  ;;  %v2330_v3 = vld [vmem:[%s2851_s1 + $0x3a8] sm:$0xff]   ;;  %v2331_v4 = vld [vmem:[%s2851_s1 + $0x360] sm:$0xff]  }
  0x49   : > { %2102 = vmatprep.subr.bf16.mxu1 %v2284_v5  ;;  %v2332_v5 = vld [vmem:[%s2851_s1 + $0x3e0] sm:$0xff]  }
  0x4b   : > { %2081 = vmatpush3.bf16.msra.mxu0 %v2285_v6  ;;  %v2333_v6 = vld [vmem:[%s2851_s1 + $0x320] sm:$0xff]  }
  0x4c   : > { %2103 = vmatpush3.bf16.msra.mxu1 %v2286_v7  ;;  %2110 = vmatprep.subr.bf16.mxu0 %v2287_v16  ;;  %v2334_v7 = vld [vmem:[%s2851_s1 + $0x3a0] sm:$0xff]   ;;  %v2343_v16 = vld [vmem:[%s2851_s1 + $0x348] sm:$0xff]  }
  0x4d   : > { %2132 = vmatprep.subr.bf16.mxu1 %v2288_v17  ;;  %v2344_v17 = vld [vmem:[%s2851_s1 + $0x3c8] sm:$0xff]  }
  0x4e   : > { %1491 = vmatmul.mubr.bf16.vlgmr.msra.gmra.mxu0 %v1870_v10  ;;  %v2337_v10 = vld [vmem:[%s2851_s1 + $0x318] sm:$0xff]  }
  0x4f   : > { %1532 = vmatmul.mubr.bf16.vlgmr.msra.gmra.mxu1 %v1872_v14  ;;  %2111 = vmatpush3.bf16.msra.mxu0 %v2289_v18  ;;  %v2341_v14 = vld [vmem:[%s2851_s1 + $0x310] sm:$0xff]   ;;  %v2345_v18 = vld [vmem:[%s2851_s1 + $0x308] sm:$0xff]  }
  0x50   : > { %2133 = vmatpush3.bf16.msra.mxu1 %v2290_v19  ;;  %2112 = vmatprep.subr.bf16.mxu0 %v2291_v20  ;;  %v2346_v19 = vld [vmem:[%s2851_s1 + $0x388] sm:$0xff]   ;;  %v2347_v20 = vld [vmem:[%s2851_s1 + $0x340] sm:$0xff]  }
  0x51   : > { %2134 = vmatprep.subr.bf16.mxu1 %v2292_v21  ;;  %1572 = vmatprep.mubr.bf16.mxu0 %v1875_v53  ;;  %v2348_v21 = vld [vmem:[%s2851_s1 + $0x3c0] sm:$0xff]  }
  0x52   : > { %1613 = vmatprep.mubr.bf16.mxu1 %v1877_v55 }
  0x53   : > { %2113 = vmatpush3.bf16.msra.mxu0 %v2293_v22  ;;  %v2349_v22 = vld [vmem:[%s2851_s1 + $0x300] sm:$0xff]  }
  0x54   : > { %2135 = vmatpush3.bf16.msra.mxu1 %v2294_v23  ;;  %2114 = vmatprep.subr.bf16.mxu0 %v2295_v24  ;;  %v2350_v23 = vld [vmem:[%s2851_s1 + $0x380] sm:$0xff]   ;;  %v262_v24 = vld [vmem:[%s2517_s14 + $0x30] sm:$0xff] }
  0x55   : > { %2136 = vmatprep.subr.bf16.mxu1 %v2296_v25  ;;  %v270_v25 = vld [vmem:[%s2517_s14 + $0x70] sm:$0xff] }
  0x57   : > { %2115 = vmatpush3.bf16.msra.mxu0 %v2297_v26  ;;  %v263_v26 = vld [vmem:[%s2517_s14 + $0x38] sm:$0xff] }
  0x58   : > { %2137 = vmatpush3.bf16.msra.mxu1 %v2298_v27  ;;  %2116 = vmatprep.subr.bf16.mxu0 %v2299_v28  ;;  %v1878_v27 = vcombine.low %v262_v24, %v270_v25  ;;  %v1879_v28 = vcombine.high %v262_v24, %v270_v25 }
  0x59   : > { %2138 = vmatprep.subr.bf16.mxu1 %v2300_v29  ;;  %v271_v29 = vld [vmem:[%s2517_s14 + $0x78] sm:$0xff]  ;;  %s1863_s14 = sshll.u32 %s2860_s29, 2  ;;  %s248_s29 = scalar_lea.vmem %s2854_s4, %s1864_s10 }
  0x5a   : > { %s238_s13 = scalar_lea.vmem %s2852_s2, %s1863_s14 }
  0x5b   : > { %2117 = vmatpush3.bf16.msra.mxu0 %v2301_v30  ;;  %v1880_v30 = vcombine.low %v263_v26, %v271_v29 }
  0x5c   : > { %2139 = vmatpush3.bf16.msra.mxu1 %v2302_v31  ;;  %2118 = vmatprep.subr.bf16.mxu0 %v2303_v32  ;;  %v1881_v31 = vcombine.high %v263_v26, %v271_v29 }
  0x5d   : > { %2140 = vmatprep.subr.bf16.mxu1 %v2304_v33 }
  0x5f   : > { %2119 = vmatpush3.bf16.msra.mxu0 %v2305_v34 }
  0x60   : > { %2141 = vmatpush3.bf16.msra.mxu1 %v2306_v35  ;;  %2120 = vmatprep.subr.bf16.mxu0 %v2307_v36 }
  0x61   : > { %2142 = vmatprep.subr.bf16.mxu1 %v2308_v37 }
  0x63   : > { %2121 = vmatpush3.bf16.msra.mxu0 %v2309_v38 }
  0x64   : > { %2143 = vmatpush3.bf16.msra.mxu1 %v2310_v39  ;;  %2122 = vmatprep.subr.bf16.mxu0 %v2311_v40 }
  0x65   : > { %2144 = vmatprep.subr.bf16.mxu1 %v2312_v41 }
  0x67   : > { %2123 = vmatpush3.bf16.msra.mxu0 %v2313_v42 }
  0x68   : > { %2145 = vmatpush3.bf16.msra.mxu1 %v2314_v43  ;;  %2124 = vmatprep.subr.bf16.mxu0 %v2315_v44 }
  0x69   : > { %2146 = vmatprep.subr.bf16.mxu1 %v2316_v45 }
  0x6b   : > { %2125 = vmatpush3.bf16.msra.mxu0 %v2317_v46 }
  0x6c   : > { %2147 = vmatpush3.bf16.msra.mxu1 %v2318_v47  ;;  %2154 = vmatprep.subr.bf16.mxu0 %v2319_v56 }
  0x6d   : > { %2176 = vmatprep.subr.bf16.mxu1 %v2320_v57 }
  0x6e   : > { %1573 = vmatmul.mubr.bf16.vlgmr.msra.gmra.mxu0 %v1874_v52 }
  0x6f   : > { %1614 = vmatmul.mubr.bf16.vlgmr.msra.gmra.mxu1 %v1876_v54  ;;  %2155 = vmatpush3.bf16.msra.mxu0 %v2321_v58 }
  0x70   : > { %2177 = vmatpush3.bf16.msra.mxu1 %v2322_v59  ;;  %2156 = vmatprep.subr.bf16.mxu0 %v2323_v60 }
  0x71   : > { %2178 = vmatprep.subr.bf16.mxu1 %v2324_v61  ;;  %1654 = vmatprep.mubr.bf16.mxu0 %v1879_v28 }
  0x72   : > { %1695 = vmatprep.mubr.bf16.mxu1 %v1881_v31 }
  0x73   : > { %2157 = vmatpush3.bf16.msra.mxu0 %v2325_v62 }
  0x74   : > { %2179 = vmatpush3.bf16.msra.mxu1 %v2326_v63  ;;  %2158 = vmatprep.subr.bf16.mxu0 %v2327_v0 }
  0x75   : > { %2180 = vmatprep.subr.bf16.mxu1 %v2328_v1 }
  0x77   : > { %2159 = vmatpush3.bf16.msra.mxu0 %v2329_v2 }
  0x78   : > { %2181 = vmatpush3.bf16.msra.mxu1 %v2330_v3  ;;  %2160 = vmatprep.subr.bf16.mxu0 %v2331_v4 }
  0x79   : > { %2182 = vmatprep.subr.bf16.mxu1 %v2332_v5 }
  0x7b   : > { %2161 = vmatpush3.bf16.msra.mxu0 %v2333_v6 }
  0x7c   : > { %2183 = vmatpush3.bf16.msra.mxu1 %v2334_v7  ;;  %2162 = vmatprep.subr.bf16.mxu0 %v2335_v8 }
  0x7d   : > { %2184 = vmatprep.subr.bf16.mxu1 %v2336_v9 }
  0x7f   : > { %2163 = vmatpush3.bf16.msra.mxu0 %v2337_v10 }
  0x80   : > { %2185 = vmatpush3.bf16.msra.mxu1 %v2338_v11  ;;  %2164 = vmatprep.subr.bf16.mxu0 %v2339_v12 }
  0x81   : > { %2186 = vmatprep.subr.bf16.mxu1 %v2340_v13 }
  0x83   : > { %2165 = vmatpush3.bf16.msra.mxu0 %v2341_v14 }
  0x84   : > { %2187 = vmatpush3.bf16.msra.mxu1 %v2342_v15  ;;  %2166 = vmatprep.subr.bf16.mxu0 %v2343_v16 }
  0x85   : > { %2188 = vmatprep.subr.bf16.mxu1 %v2344_v17 }
  0x87   : > { %2167 = vmatpush3.bf16.msra.mxu0 %v2345_v18 }
  0x88   : > { %2189 = vmatpush3.bf16.msra.mxu1 %v2346_v19  ;;  %2168 = vmatprep.subr.bf16.mxu0 %v2347_v20 }
  0x89   : > { %2190 = vmatprep.subr.bf16.mxu1 %v2348_v21 }
  0x8b   : > { %2169 = vmatpush3.bf16.msra.mxu0 %v2349_v22 }
  0x8c   : > { %2191 = vmatpush3.bf16.msra.mxu1 %v2350_v23 }
  0x8e   : > { %1655 = vmatmul.mubr.bf16.vlgmr.msra.gmra.mxu0 %v1878_v27 }
  0x8f   : > { %1696 = vmatmul.mubr.bf16.vlgmr.msra.gmra.mxu1 %v1880_v30 }
  0xee   : > { %v2038_v32 = vpop.f32.mrf.mxu0 }
  0xef   : > { %v2060_v33 = vpop.f32.mrf.mxu1 }
  0xf0   : > { %v2039_v34 = vpop.f32.mrf.mxu0 }
  0xf1   : > { %v2061_v35 = vpop.f32.mrf.mxu1  ;;  %v2040_v49 = vadd.f32 %v2039_v34, %v2038_v32 }
  0xf2   : > { %v2041_v36 = vpop.f32.mrf.mxu0  ;;  %v2062_v50 = vadd.f32 %v2061_v35, %v2060_v33 }
  0xf3   : > { %v2063_v37 = vpop.f32.mrf.mxu1 }
  0xf4   : > { %v2042_v38 = vpop.f32.mrf.mxu0  ;;  %v1452_v54 = vadd.f32 %v2062_v50, %v2040_v49 }
  0xf5   : > { %v2064_v40 = vpop.f32.mrf.mxu1  ;;  %v2043_v55 = vadd.f32 %v2042_v38, %v2041_v36 }
  0xf6   : > { %v2065_v56 = vadd.f32 %v2064_v40, %v2063_v37 }
  0xf8   : > { %v1455_v62 = vadd.f32 %v2065_v56, %v2043_v55 }
 0x10e   : > { %v2082_v39 = vpop.f32.mrf.mxu0 }
 0x10f   : > { %v2104_v41 = vpop.f32.mrf.mxu1 }
 0x110   : > { %v2083_v42 = vpop.f32.mrf.mxu0 }
 0x111   : > { %v2105_v43 = vpop.f32.mrf.mxu1  ;;  %v2084_v53 = vadd.f32 %v2083_v42, %v2082_v39 }
 0x112   : > { %v2085_v44 = vpop.f32.mrf.mxu0  ;;  %v2106_v60 = vadd.f32 %v2105_v43, %v2104_v41 }
 0x113   : > { %v2107_v45 = vpop.f32.mrf.mxu1  ;;  %v1493_v59 = vadd.f32 %v2084_v53, %v1452_v54 }
 0x114   : > { %v2086_v46 = vpop.f32.mrf.mxu0 }
 0x115   : > { %v2108_v48 = vpop.f32.mrf.mxu1  ;;  %v2087_v61 = vadd.f32 %v2086_v46, %v2085_v44  ;;  %v1534_v2 = vadd.f32 %v2106_v60, %v1493_v59 }
 0x116   : > { %v2109_v4 = vadd.f32 %v2108_v48, %v2107_v45 }
 0x117   : > { %v1496_v3 = vadd.f32 %v2087_v61, %v1455_v62 }
 0x119   : > { %v1537_v10 = vadd.f32 %v2109_v4, %v1496_v3 }
 0x12e   : > { %v2126_v47 = vpop.f32.mrf.mxu0 }
 0x12f   : > { %v2148_v51 = vpop.f32.mrf.mxu1 }
 0x130   : > { %v2127_v52 = vpop.f32.mrf.mxu0 }
 0x131   : > { %v2149_v57 = vpop.f32.mrf.mxu1  ;;  %v2128_v63 = vadd.f32 %v2127_v52, %v2126_v47 }
 0x132   : > { %v2129_v58 = vpop.f32.mrf.mxu0  ;;  %v2150_v6 = vadd.f32 %v2149_v57, %v2148_v51 }
 0x133   : > { %v2151_v0 = vpop.f32.mrf.mxu1  ;;  %v1575_v5 = vadd.f32 %v2128_v63, %v1534_v2 }
 0x134   : > { %v2130_v1 = vpop.f32.mrf.mxu0 }
 0x135   : > { %v2131_v7 = vadd.f32 %v2130_v1, %v2129_v58  ;;  %v2152_v8 = vpop.f32.mrf.mxu1  ;;  %v1616_v13 = vadd.f32 %v2150_v6, %v1575_v5 }
 0x136   : > { %v2153_v18 = vadd.f32 %v2152_v8, %v2151_v0 }
 0x137   : > { %v1578_v14 = vadd.f32 %v2131_v7, %v1537_v10 }
 0x139   : > { %v1619_v22 = vadd.f32 %v2153_v18, %v1578_v14 }
 0x14e   : > { %v2170_v9 = vpop.f32.mrf.mxu0 }
 0x14f   : > { %v2192_v11 = vpop.f32.mrf.mxu1 }
 0x150   : > { %v2171_v12 = vpop.f32.mrf.mxu0 }
 0x151   : > { %v2172_v15 = vadd.f32 %v2171_v12, %v2170_v9  ;;  %v2193_v16 = vpop.f32.mrf.mxu1 }
 0x152   : > { %v2173_v17 = vpop.f32.mrf.mxu0  ;;  %v2194_v23 = vadd.f32 %v2193_v16, %v2192_v11 }
 0x153   : > { %v1657_v19 = vadd.f32 %v2172_v15, %v1616_v13  ;;  %v2195_v20 = vpop.f32.mrf.mxu1 }
 0x154   : > { %v2174_v21 = vpop.f32.mrf.mxu0 }
 0x155   : > { %v2175_v24 = vadd.f32 %v2174_v21, %v2173_v17  ;;  %v2196_v25 = vpop.f32.mrf.mxu1  ;;  %v1698_v26 = vadd.f32 %v2194_v23, %v1657_v19 }
 0x156   : > { %v2197_v28 = vadd.f32 %v2196_v25, %v2195_v20 }
 0x157   : > { %v1660_v27 = vadd.f32 %v2175_v24, %v1619_v22  ;;  %v1719_v30 = vmul.f32 %v1698_v26, %v1698_v26 }
 0x159   : > { %v1701_v29 = vadd.f32 %v2197_v28, %v1660_v27 }
 0x15b   : > { %v2020_v31 = vpack.c.bf16 %v1701_v29, %v1698_v26  ;;  %v1715_v32 = vadd.f32 %v1701_v29, %v1698_v26  ;;  %v1720_v33 = vmul.f32 %v1701_v29, %v1701_v29 }
 0x15d   : > { %2021 = vst [vmem:[%s238_s13] sm:$0xff] %v2020_v31   ;;  %v1721_v34 = vadd.f32 %v1720_v33, %v1719_v30  ;;  %1717 = vst [vmem:[%s244_s21] sm:$0xff] %v1715_v32 }
 0x15f   : > { %1723 = vst [vmem:[%s248_s29] sm:$0xff] %v1721_v34 }
 0x160 PF: > { %s15_s17 = sadd.s32 1, %s2373_s17   ;;  %s2855_s15 = smov %s2369_s16 }
 0x161   : > { %p12_p6 = scmp.ge.s32.totalorder %s15_s17, 4   ;;  %s2856_s16 = smov %s2858_s18 }
 0x163   :  { %14 = sbr.rel (!%p12_p6) target bundleno = 2 (0x2), region = 86 }

</bundles_post_ra>
